<compile_context>
chip_gen: v5e
topology: v5e:2x2
jax: 0.10.0
libtpu: 0.0.40
codegen_flags: <defaults>
</compile_context>

<pallas_src>
import functools

import jax
import jax.numpy as jnp
from jax import lax
from jax.experimental import pallas as pl
from jax.experimental.pallas import tpu as pltpu

BN_EPS = 1e-5
EXPANSION = 4


# --------------------------------- kernel ------------------------------------

def _make_bottleneck_kernel(*, stride, has_sc):
    def kernel(x_ref, w1_ref, bn1_ref, w2_ref, bn2_ref, w3_ref, bn3_ref, *rest):
        if has_sc:
            ws_ref, bns_ref, out_ref, h1p_ref = rest
        else:
            out_ref, h1p_ref = rest

        B, H, W, Cin = x_ref.shape
        Cmid = w1_ref.shape[1]
        Cout = w3_ref.shape[1]
        _, Ho, Wo, _ = out_ref.shape
        M1 = B * H * W
        M2 = B * Ho * Wo

        def win_ds(start, size):
            # strided window along a spatial dim (plain slice when stride == 1)
            if stride == 1:
                return pl.ds(start, size)
            return pl.ds(start, size, stride=stride)

        x = x_ref[...]                                    # (B, H, W, Cin) f32
        x2d = x.reshape(M1, Cin)

        # ---- conv1x1 -> BN -> ReLU  (bf16 MXU operands, f32 accumulate) -----
        h1 = jnp.dot(x2d.astype(jnp.bfloat16), w1_ref[...],
                     preferred_element_type=jnp.float32)
        h1 = jnp.maximum(h1 * bn1_ref[0] + bn1_ref[1], 0.0)     # (M1, Cmid)

        # ---- zero-pad h1 (padding=1) into VMEM scratch -----------------------
        h1p_ref[...] = jnp.zeros(h1p_ref.shape, jnp.float32)
        h1p_ref[:, 1:H + 1, 1:W + 1, :] = h1.reshape(B, H, W, Cmid)

        # ---- conv3x3 (stride) as 9 shifted matmuls -> BN -> ReLU -------------
        acc = jnp.zeros((M2, Cmid), jnp.float32)
        for t in range(9):
            di, dj = t // 3, t % 3
            win = h1p_ref[:, win_ds(di, Ho), win_ds(dj, Wo), :]   # (B,Ho,Wo,Cmid)
            acc = acc + jnp.dot(win.reshape(M2, Cmid).astype(jnp.bfloat16),
                                w2_ref[t],
                                preferred_element_type=jnp.float32)
        h2 = jnp.maximum(acc * bn2_ref[0] + bn2_ref[1], 0.0)     # (M2, Cmid)

        # ---- conv1x1 -> BN ----------------------------------------------------
        h3 = jnp.dot(h2.astype(jnp.bfloat16), w3_ref[...],
                     preferred_element_type=jnp.float32)
        h3 = h3 * bn3_ref[0] + bn3_ref[1]                        # (M2, Cout)

        # ---- shortcut ---------------------------------------------------------
        if has_sc:
            if stride == 1:
                xsub = x2d                                       # (M2, Cin)
            else:
                xsub = x_ref[:, win_ds(0, Ho), win_ds(0, Wo), :].reshape(M2, Cin)
            sc = jnp.dot(xsub.astype(jnp.bfloat16), ws_ref[...],
                         preferred_element_type=jnp.float32)
            sc = sc * bns_ref[0] + bns_ref[1]
        else:
            sc = x2d                                             # identity

        out_ref[...] = jnp.maximum(h3 + sc, 0.0).reshape(B, Ho, Wo, Cout)

    return kernel


# ------------------------------ pallas wrapper --------------------------------

def bottleneck_forward(x_nchw, params, *, stride):
    """Forward pass of BottleNeck. x: (B, Cin, H, W) f32 -> (B, 4*Cmid, Ho, Wo)."""
    B, Cin, H, W = x_nchw.shape
    Cmid = params["w1"].shape[1]
    Cout = params["w3"].shape[1]
    has_sc = "ws" in params
    Ho = (H + 2 - 3) // stride + 1
    Wo = (W + 2 - 3) // stride + 1

    x_nhwc = jnp.transpose(x_nchw, (0, 2, 3, 1))

    def rep(shape):
        n = len(shape)
        return pl.BlockSpec(shape, lambda i, n=n: (0,) * n)

    in_specs = [
        rep((B, H, W, Cin)),
        rep((Cin, Cmid)), rep((2, 1, Cmid)),
        rep((9, Cmid, Cmid)), rep((2, 1, Cmid)),
        rep((Cmid, Cout)), rep((2, 1, Cout)),
    ]
    args = [x_nhwc, params["w1"], params["bn1"], params["w2"], params["bn2"],
            params["w3"], params["bn3"]]
    if has_sc:
        in_specs += [rep((Cin, Cout)), rep((2, 1, Cout))]
        args += [params["ws"], params["bns"]]

    flops = (2 * B * H * W * Cin * Cmid
             + 2 * B * Ho * Wo * 9 * Cmid * Cmid
             + 2 * B * Ho * Wo * Cmid * Cout
             + (2 * B * Ho * Wo * Cin * Cout if has_sc else 0))
    bytes_accessed = (sum(int(a.size) * a.dtype.itemsize for a in args)
                      + B * Ho * Wo * Cout * 4)

    out_nhwc = pl.pallas_call(
        _make_bottleneck_kernel(stride=stride, has_sc=has_sc),
        out_shape=jax.ShapeDtypeStruct((B, Ho, Wo, Cout), jnp.float32),
        grid=(1,),
        in_specs=in_specs,
        out_specs=rep((B, Ho, Wo, Cout)),
        scratch_shapes=[pltpu.VMEM((B, H + 2, W + 2, Cmid), jnp.float32)],
        compiler_params=pltpu.CompilerParams(
            dimension_semantics=("arbitrary",)),
        cost_estimate=pl.CostEstimate(flops=flops, transcendentals=0,
                                      bytes_accessed=bytes_accessed),
    )(*args)

    return jnp.transpose(out_nhwc, (0, 3, 1, 2))


# ------------------------------ parameters ------------------------------------

def init_bottleneck_params(key, *, in_channels, out_channels, stride):
    Cin, Cmid = in_channels, out_channels
    Cout = out_channels * EXPANSION
    has_sc = (stride != 1) or (Cin != Cout)
    ks = jax.random.split(key, 8)

    def conv_w(k, fan_in, shape):
        w = jax.random.normal(k, shape, jnp.float32) / jnp.sqrt(float(fan_in))
        return w.astype(jnp.bfloat16)          # weights stored bf16 in HBM

    def bn_pack(k, c):
        k1, k2, k3, k4 = jax.random.split(k, 4)
        gamma = 1.0 + 0.1 * jax.random.normal(k1, (c,), jnp.float32)
        beta = 0.1 * jax.random.normal(k2, (c,), jnp.float32)
        mean = 0.1 * jax.random.normal(k3, (c,), jnp.float32)
        var = jax.random.uniform(k4, (c,), jnp.float32, minval=0.5, maxval=1.5)
        scale = gamma * lax.rsqrt(var + BN_EPS)
        shift = beta - mean * scale
        return jnp.stack([scale, shift]).reshape(2, 1, c)

    p = dict(
        w1=conv_w(ks[0], Cin, (Cin, Cmid)),            # conv1x1: (Cin, Cmid)
        bn1=bn_pack(ks[1], Cmid),
        w2=conv_w(ks[2], 9 * Cmid, (9, Cmid, Cmid)),   # conv3x3: tap-major
        bn2=bn_pack(ks[3], Cmid),
        w3=conv_w(ks[4], Cmid, (Cmid, Cout)),          # conv1x1: (Cmid, Cout)
        bn3=bn_pack(ks[5], Cout),
    )
    if has_sc:
        p["ws"] = conv_w(ks[6], Cin, (Cin, Cout))
        p["bns"] = bn_pack(ks[7], Cout)
    return p


# ------------------------------ pure-JAX reference -----------------------------

def bottleneck_reference(x_nchw, params, *, stride):
    def conv(x, w_oihw, s, pad):
        return lax.conv_general_dilated(
            x, w_oihw, window_strides=(s, s), padding=pad,
            dimension_numbers=("NCHW", "OIHW", "NCHW"))

    def bn(x, pack):
        scale = pack[0, 0].reshape(1, -1, 1, 1)
        shift = pack[1, 0].reshape(1, -1, 1, 1)
        return x * scale + shift

    w1 = params["w1"].astype(jnp.float32)
    Cin, Cmid = w1.shape
    w3 = params["w3"].astype(jnp.float32)
    Cout = w3.shape[1]
    w1_oihw = w1.T.reshape(Cmid, Cin, 1, 1)
    w2 = params["w2"].astype(jnp.float32).reshape(3, 3, Cmid, Cmid)
    w2_oihw = jnp.transpose(w2, (3, 2, 0, 1))
    w3_oihw = w3.T.reshape(Cout, Cmid, 1, 1)

    h = jax.nn.relu(bn(conv(x_nchw, w1_oihw, 1, [(0, 0), (0, 0)]), params["bn1"]))
    h = jax.nn.relu(bn(conv(h, w2_oihw, stride, [(1, 1), (1, 1)]), params["bn2"]))
    h = bn(conv(h, w3_oihw, 1, [(0, 0), (0, 0)]), params["bn3"])
    if "ws" in params:
        ws = params["ws"].astype(jnp.float32)
        ws_oihw = ws.T.reshape(Cout, Cin, 1, 1)
        sc = bn(conv(x_nchw, ws_oihw, stride, [(0, 0), (0, 0)]), params["bns"])
    else:
        sc = x_nchw
    return jax.nn.relu(h + sc)


# ----------------------------------- main --------------------------------------

def _run_case(key, *, batch, in_channels, out_channels, stride, hw):
    kx, kp = jax.random.split(key)
    params = init_bottleneck_params(kp, in_channels=in_channels,
                                    out_channels=out_channels, stride=stride)
    x = jax.random.normal(kx, (batch, in_channels, hw, hw), jnp.float32)

    fwd = jax.jit(functools.partial(bottleneck_forward, stride=stride))
    y = fwd(x, params)
    jax.block_until_ready(y)

    y_ref = bottleneck_reference(x, params, stride=stride)
    assert y.shape == y_ref.shape, (y.shape, y_ref.shape)
    assert bool(jnp.all(jnp.isfinite(y)))
    # bf16 matmul operands vs f32 reference -> loose tolerance
    assert bool(jnp.allclose(y, y_ref, rtol=0.1, atol=0.1)), (
        "max abs err", float(jnp.max(jnp.abs(y - y_ref))))
    return y


if __name__ == "__main__":
    key = jax.random.PRNGKey(0)
    k1, k2, k3 = jax.random.split(key, 3)

    # 1) Downsampling bottleneck: stride=2, conv shortcut (Cin=64 -> Cout=128).
    _run_case(k1, batch=2, in_channels=64, out_channels=32, stride=2, hw=16)
    # 2) Identity-shortcut bottleneck: stride=1, Cin == 4*out_channels.
    _run_case(k2, batch=2, in_channels=128, out_channels=32, stride=1, hw=16)
    # 3) Stride-1 bottleneck with conv shortcut (channel expansion only).
    _run_case(k3, batch=2, in_channels=64, out_channels=32, stride=1, hw=16)

    print("KERNEL_OK")
</pallas_src>

<mosaic_0001>
module attributes {stable_mosaic.version = 11 : i64} {
  func.func @kernel(%arg0: i32, %arg1: memref<2x16x16x64xf32, #tpu.memory_space<vmem>>, %arg2: memref<64x32xbf16, #tpu.memory_space<vmem>>, %arg3: memref<2x1x32xf32, #tpu.memory_space<vmem>>, %arg4: memref<9x32x32xbf16, #tpu.memory_space<vmem>>, %arg5: memref<2x1x32xf32, #tpu.memory_space<vmem>>, %arg6: memref<32x128xbf16, #tpu.memory_space<vmem>>, %arg7: memref<2x1x128xf32, #tpu.memory_space<vmem>>, %arg8: memref<64x128xbf16, #tpu.memory_space<vmem>>, %arg9: memref<2x1x128xf32, #tpu.memory_space<vmem>>, %arg10: memref<2x8x8x128xf32, #tpu.memory_space<vmem>>, %arg11: memref<2x18x18x32xf32, #tpu.memory_space<vmem>>) attributes {dimension_semantics = [#tpu.dimension_semantics<arbitrary>], iteration_bounds = array<i64: 1>, scalar_prefetch = 0 : i64, scratch_operands = 1 : i64, tpu.core_type = #tpu.core_type<tc>, window_params = [{pipeline_mode = #tpu.pipeline_mode<synchronous>, transform_indices = @transform_0, window_bounds = array<i64: 2, 16, 16, 64>}, {pipeline_mode = #tpu.pipeline_mode<synchronous>, transform_indices = @transform_1, window_bounds = array<i64: 64, 32>}, {pipeline_mode = #tpu.pipeline_mode<synchronous>, transform_indices = @transform_2, window_bounds = array<i64: 2, 1, 32>}, {pipeline_mode = #tpu.pipeline_mode<synchronous>, transform_indices = @transform_3, window_bounds = array<i64: 9, 32, 32>}, {pipeline_mode = #tpu.pipeline_mode<synchronous>, transform_indices = @transform_4, window_bounds = array<i64: 2, 1, 32>}, {pipeline_mode = #tpu.pipeline_mode<synchronous>, transform_indices = @transform_5, window_bounds = array<i64: 32, 128>}, {pipeline_mode = #tpu.pipeline_mode<synchronous>, transform_indices = @transform_6, window_bounds = array<i64: 2, 1, 128>}, {pipeline_mode = #tpu.pipeline_mode<synchronous>, transform_indices = @transform_7, window_bounds = array<i64: 64, 128>}, {pipeline_mode = #tpu.pipeline_mode<synchronous>, transform_indices = @transform_8, window_bounds = array<i64: 2, 1, 128>}, {pipeline_mode = #tpu.pipeline_mode<synchronous>, transform_indices = @transform_9, window_bounds = array<i64: 2, 8, 8, 128>}]} {
    %c0 = arith.constant 0 : index
    %c0_0 = arith.constant 0 : index
    %c0_1 = arith.constant 0 : index
    %c0_2 = arith.constant 0 : index
    %0 = vector.load %arg1[%c0, %c0_0, %c0_1, %c0_2] : memref<2x16x16x64xf32, #tpu.memory_space<vmem>>, vector<2x16x16x64xf32>
    %1 = vector.shape_cast %0 : vector<2x16x16x64xf32> to vector<512x64xf32>
    %2 = arith.truncf %1 : vector<512x64xf32> to vector<512x64xbf16>
    %c0_3 = arith.constant 0 : index
    %c0_4 = arith.constant 0 : index
    %3 = vector.load %arg2[%c0_3, %c0_4] : memref<64x32xbf16, #tpu.memory_space<vmem>>, vector<64x32xbf16>
    %cst = arith.constant dense<0.000000e+00> : vector<512x32xf32>
    %4 = tpu.matmul %2, %3, %cst {dimension_numbers = #tpu.dot_dimension_numbers<[1], [0], [0], [1], [0, 0, 1, 1], [], []>} : vector<512x64xbf16>, vector<64x32xbf16>, vector<512x32xf32> -> vector<512x32xf32>
    %c0_5 = arith.constant 0 : index
    %c0_6 = arith.constant 0 : index
    %c0_7 = arith.constant 0 : index
    %5 = vector.load %arg3[%c0_5, %c0_6, %c0_7] : memref<2x1x32xf32, #tpu.memory_space<vmem>>, vector<1x1x32xf32>
    %6 = vector.shape_cast %5 : vector<1x1x32xf32> to vector<1x32xf32>
    %7 = vector.broadcast %6 : vector<1x32xf32> to vector<512x32xf32>
    %8 = arith.mulf %4, %7 : vector<512x32xf32>
    %c1 = arith.constant 1 : index
    %c0_8 = arith.constant 0 : index
    %c0_9 = arith.constant 0 : index
    %9 = vector.load %arg3[%c1, %c0_8, %c0_9] : memref<2x1x32xf32, #tpu.memory_space<vmem>>, vector<1x1x32xf32>
    %10 = vector.shape_cast %9 : vector<1x1x32xf32> to vector<1x32xf32>
    %11 = vector.broadcast %10 : vector<1x32xf32> to vector<512x32xf32>
    %12 = arith.addf %8, %11 : vector<512x32xf32>
    %cst_10 = arith.constant 0.000000e+00 : f32
    %13 = vector.broadcast %cst_10 : f32 to vector<512x32xf32>
    %14 = arith.maximumf %12, %13 : vector<512x32xf32>
    %cst_11 = arith.constant 0.000000e+00 : f32
    %15 = vector.broadcast %cst_11 : f32 to vector<2x18x18x32xf32>
    %c0_12 = arith.constant 0 : index
    %c0_13 = arith.constant 0 : index
    %c0_14 = arith.constant 0 : index
    %c0_15 = arith.constant 0 : index
    %16 = vector.load %arg11[%c0_12, %c0_13, %c0_14, %c0_15] : memref<2x18x18x32xf32, #tpu.memory_space<vmem>>, vector<2x18x18x32xf32>
    tpu.vector_store %arg11[%c0_12, %c0_13, %c0_14, %c0_15], %15 {strides = array<i32>} : memref<2x18x18x32xf32, #tpu.memory_space<vmem>>, vector<2x18x18x32xf32>,
    %17 = vector.shape_cast %14 : vector<512x32xf32> to vector<2x16x16x32xf32>
    %c0_16 = arith.constant 0 : index
    %c1_17 = arith.constant 1 : index
    %c1_18 = arith.constant 1 : index
    %c0_19 = arith.constant 0 : index
    %18 = vector.load %arg11[%c0_16, %c1_17, %c1_18, %c0_19] : memref<2x18x18x32xf32, #tpu.memory_space<vmem>>, vector<2x16x16x32xf32>
    tpu.vector_store %arg11[%c0_16, %c1_17, %c1_18, %c0_19], %17 {strides = array<i32>} : memref<2x18x18x32xf32, #tpu.memory_space<vmem>>, vector<2x16x16x32xf32>,
    %cst_20 = arith.constant 0.000000e+00 : f32
    %19 = vector.broadcast %cst_20 : f32 to vector<128x32xf32>
    %c0_21 = arith.constant 0 : index
    %c0_22 = arith.constant 0 : index
    %c0_23 = arith.constant 0 : index
    %c0_24 = arith.constant 0 : index
    %20 = tpu.strided_load %arg11[%c0_21, %c0_22, %c0_23, %c0_24] {strides = array<i32: 1, 2, 2, 1>} : memref<2x18x18x32xf32, #tpu.memory_space<vmem>>, vector<2x8x8x32xf32>
    %21 = vector.shape_cast %20 : vector<2x8x8x32xf32> to vector<128x32xf32>
    %22 = arith.truncf %21 : vector<128x32xf32> to vector<128x32xbf16>
    %c0_25 = arith.constant 0 : index
    %c0_26 = arith.constant 0 : index
    %c0_27 = arith.constant 0 : index
    %23 = vector.load %arg4[%c0_25, %c0_26, %c0_27] : memref<9x32x32xbf16, #tpu.memory_space<vmem>>, vector<1x32x32xbf16>
    %24 = vector.shape_cast %23 : vector<1x32x32xbf16> to vector<32x32xbf16>
    %cst_28 = arith.constant dense<0.000000e+00> : vector<128x32xf32>
    %25 = tpu.matmul %22, %24, %cst_28 {dimension_numbers = #tpu.dot_dimension_numbers<[1], [0], [0], [1], [0, 0, 1, 1], [], []>} : vector<128x32xbf16>, vector<32x32xbf16>, vector<128x32xf32> -> vector<128x32xf32>
    %26 = arith.addf %19, %25 : vector<128x32xf32>
    %c0_29 = arith.constant 0 : index
    %c0_30 = arith.constant 0 : index
    %c1_31 = arith.constant 1 : index
    %c0_32 = arith.constant 0 : index
    %27 = tpu.strided_load %arg11[%c0_29, %c0_30, %c1_31, %c0_32] {strides = array<i32: 1, 2, 2, 1>} : memref<2x18x18x32xf32, #tpu.memory_space<vmem>>, vector<2x8x8x32xf32>
    %28 = vector.shape_cast %27 : vector<2x8x8x32xf32> to vector<128x32xf32>
    %29 = arith.truncf %28 : vector<128x32xf32> to vector<128x32xbf16>
    %c1_33 = arith.constant 1 : index
    %c0_34 = arith.constant 0 : index
    %c0_35 = arith.constant 0 : index
    %30 = vector.load %arg4[%c1_33, %c0_34, %c0_35] : memref<9x32x32xbf16, #tpu.memory_space<vmem>>, vector<1x32x32xbf16>
    %31 = vector.shape_cast %30 : vector<1x32x32xbf16> to vector<32x32xbf16>
    %cst_36 = arith.constant dense<0.000000e+00> : vector<128x32xf32>
    %32 = tpu.matmul %29, %31, %cst_36 {dimension_numbers = #tpu.dot_dimension_numbers<[1], [0], [0], [1], [0, 0, 1, 1], [], []>} : vector<128x32xbf16>, vector<32x32xbf16>, vector<128x32xf32> -> vector<128x32xf32>
    %33 = arith.addf %26, %32 : vector<128x32xf32>
    %c0_37 = arith.constant 0 : index
    %c0_38 = arith.constant 0 : index
    %c2 = arith.constant 2 : index
    %c0_39 = arith.constant 0 : index
    %34 = tpu.strided_load %arg11[%c0_37, %c0_38, %c2, %c0_39] {strides = array<i32: 1, 2, 2, 1>} : memref<2x18x18x32xf32, #tpu.memory_space<vmem>>, vector<2x8x8x32xf32>
    %35 = vector.shape_cast %34 : vector<2x8x8x32xf32> to vector<128x32xf32>
    %36 = arith.truncf %35 : vector<128x32xf32> to vector<128x32xbf16>
    %c2_40 = arith.constant 2 : index
    %c0_41 = arith.constant 0 : index
    %c0_42 = arith.constant 0 : index
    %37 = vector.load %arg4[%c2_40, %c0_41, %c0_42] : memref<9x32x32xbf16, #tpu.memory_space<vmem>>, vector<1x32x32xbf16>
    %38 = vector.shape_cast %37 : vector<1x32x32xbf16> to vector<32x32xbf16>
    %cst_43 = arith.constant dense<0.000000e+00> : vector<128x32xf32>
    %39 = tpu.matmul %36, %38, %cst_43 {dimension_numbers = #tpu.dot_dimension_numbers<[1], [0], [0], [1], [0, 0, 1, 1], [], []>} : vector<128x32xbf16>, vector<32x32xbf16>, vector<128x32xf32> -> vector<128x32xf32>
    %40 = arith.addf %33, %39 : vector<128x32xf32>
    %c0_44 = arith.constant 0 : index
    %c1_45 = arith.constant 1 : index
    %c0_46 = arith.constant 0 : index
    %c0_47 = arith.constant 0 : index
    %41 = tpu.strided_load %arg11[%c0_44, %c1_45, %c0_46, %c0_47] {strides = array<i32: 1, 2, 2, 1>} : memref<2x18x18x32xf32, #tpu.memory_space<vmem>>, vector<2x8x8x32xf32>
    %42 = vector.shape_cast %41 : vector<2x8x8x32xf32> to vector<128x32xf32>
    %43 = arith.truncf %42 : vector<128x32xf32> to vector<128x32xbf16>
    %c3 = arith.constant 3 : index
    %c0_48 = arith.constant 0 : index
    %c0_49 = arith.constant 0 : index
    %44 = vector.load %arg4[%c3, %c0_48, %c0_49] : memref<9x32x32xbf16, #tpu.memory_space<vmem>>, vector<1x32x32xbf16>
    %45 = vector.shape_cast %44 : vector<1x32x32xbf16> to vector<32x32xbf16>
    %cst_50 = arith.constant dense<0.000000e+00> : vector<128x32xf32>
    %46 = tpu.matmul %43, %45, %cst_50 {dimension_numbers = #tpu.dot_dimension_numbers<[1], [0], [0], [1], [0, 0, 1, 1], [], []>} : vector<128x32xbf16>, vector<32x32xbf16>, vector<128x32xf32> -> vector<128x32xf32>
    %47 = arith.addf %40, %46 : vector<128x32xf32>
    %c0_51 = arith.constant 0 : index
    %c1_52 = arith.constant 1 : index
    %c1_53 = arith.constant 1 : index
    %c0_54 = arith.constant 0 : index
    %48 = tpu.strided_load %arg11[%c0_51, %c1_52, %c1_53, %c0_54] {strides = array<i32: 1, 2, 2, 1>} : memref<2x18x18x32xf32, #tpu.memory_space<vmem>>, vector<2x8x8x32xf32>
    %49 = vector.shape_cast %48 : vector<2x8x8x32xf32> to vector<128x32xf32>
    %50 = arith.truncf %49 : vector<128x32xf32> to vector<128x32xbf16>
    %c4 = arith.constant 4 : index
    %c0_55 = arith.constant 0 : index
    %c0_56 = arith.constant 0 : index
    %51 = vector.load %arg4[%c4, %c0_55, %c0_56] : memref<9x32x32xbf16, #tpu.memory_space<vmem>>, vector<1x32x32xbf16>
    %52 = vector.shape_cast %51 : vector<1x32x32xbf16> to vector<32x32xbf16>
    %cst_57 = arith.constant dense<0.000000e+00> : vector<128x32xf32>
    %53 = tpu.matmul %50, %52, %cst_57 {dimension_numbers = #tpu.dot_dimension_numbers<[1], [0], [0], [1], [0, 0, 1, 1], [], []>} : vector<128x32xbf16>, vector<32x32xbf16>, vector<128x32xf32> -> vector<128x32xf32>
    %54 = arith.addf %47, %53 : vector<128x32xf32>
    %c0_58 = arith.constant 0 : index
    %c1_59 = arith.constant 1 : index
    %c2_60 = arith.constant 2 : index
    %c0_61 = arith.constant 0 : index
    %55 = tpu.strided_load %arg11[%c0_58, %c1_59, %c2_60, %c0_61] {strides = array<i32: 1, 2, 2, 1>} : memref<2x18x18x32xf32, #tpu.memory_space<vmem>>, vector<2x8x8x32xf32>
    %56 = vector.shape_cast %55 : vector<2x8x8x32xf32> to vector<128x32xf32>
    %57 = arith.truncf %56 : vector<128x32xf32> to vector<128x32xbf16>
    %c5 = arith.constant 5 : index
    %c0_62 = arith.constant 0 : index
    %c0_63 = arith.constant 0 : index
    %58 = vector.load %arg4[%c5, %c0_62, %c0_63] : memref<9x32x32xbf16, #tpu.memory_space<vmem>>, vector<1x32x32xbf16>
    %59 = vector.shape_cast %58 : vector<1x32x32xbf16> to vector<32x32xbf16>
    %cst_64 = arith.constant dense<0.000000e+00> : vector<128x32xf32>
    %60 = tpu.matmul %57, %59, %cst_64 {dimension_numbers = #tpu.dot_dimension_numbers<[1], [0], [0], [1], [0, 0, 1, 1], [], []>} : vector<128x32xbf16>, vector<32x32xbf16>, vector<128x32xf32> -> vector<128x32xf32>
    %61 = arith.addf %54, %60 : vector<128x32xf32>
    %c0_65 = arith.constant 0 : index
    %c2_66 = arith.constant 2 : index
    %c0_67 = arith.constant 0 : index
    %c0_68 = arith.constant 0 : index
    %62 = tpu.strided_load %arg11[%c0_65, %c2_66, %c0_67, %c0_68] {strides = array<i32: 1, 2, 2, 1>} : memref<2x18x18x32xf32, #tpu.memory_space<vmem>>, vector<2x8x8x32xf32>
    %63 = vector.shape_cast %62 : vector<2x8x8x32xf32> to vector<128x32xf32>
    %64 = arith.truncf %63 : vector<128x32xf32> to vector<128x32xbf16>
    %c6 = arith.constant 6 : index
    %c0_69 = arith.constant 0 : index
    %c0_70 = arith.constant 0 : index
    %65 = vector.load %arg4[%c6, %c0_69, %c0_70] : memref<9x32x32xbf16, #tpu.memory_space<vmem>>, vector<1x32x32xbf16>
    %66 = vector.shape_cast %65 : vector<1x32x32xbf16> to vector<32x32xbf16>
    %cst_71 = arith.constant dense<0.000000e+00> : vector<128x32xf32>
    %67 = tpu.matmul %64, %66, %cst_71 {dimension_numbers = #tpu.dot_dimension_numbers<[1], [0], [0], [1], [0, 0, 1, 1], [], []>} : vector<128x32xbf16>, vector<32x32xbf16>, vector<128x32xf32> -> vector<128x32xf32>
    %68 = arith.addf %61, %67 : vector<128x32xf32>
    %c0_72 = arith.constant 0 : index
    %c2_73 = arith.constant 2 : index
    %c1_74 = arith.constant 1 : index
    %c0_75 = arith.constant 0 : index
    %69 = tpu.strided_load %arg11[%c0_72, %c2_73, %c1_74, %c0_75] {strides = array<i32: 1, 2, 2, 1>} : memref<2x18x18x32xf32, #tpu.memory_space<vmem>>, vector<2x8x8x32xf32>
    %70 = vector.shape_cast %69 : vector<2x8x8x32xf32> to vector<128x32xf32>
    %71 = arith.truncf %70 : vector<128x32xf32> to vector<128x32xbf16>
    %c7 = arith.constant 7 : index
    %c0_76 = arith.constant 0 : index
    %c0_77 = arith.constant 0 : index
    %72 = vector.load %arg4[%c7, %c0_76, %c0_77] : memref<9x32x32xbf16, #tpu.memory_space<vmem>>, vector<1x32x32xbf16>
    %73 = vector.shape_cast %72 : vector<1x32x32xbf16> to vector<32x32xbf16>
    %cst_78 = arith.constant dense<0.000000e+00> : vector<128x32xf32>
    %74 = tpu.matmul %71, %73, %cst_78 {dimension_numbers = #tpu.dot_dimension_numbers<[1], [0], [0], [1], [0, 0, 1, 1], [], []>} : vector<128x32xbf16>, vector<32x32xbf16>, vector<128x32xf32> -> vector<128x32xf32>
    %75 = arith.addf %68, %74 : vector<128x32xf32>
    %c0_79 = arith.constant 0 : index
    %c2_80 = arith.constant 2 : index
    %c2_81 = arith.constant 2 : index
    %c0_82 = arith.constant 0 : index
    %76 = tpu.strided_load %arg11[%c0_79, %c2_80, %c2_81, %c0_82] {strides = array<i32: 1, 2, 2, 1>} : memref<2x18x18x32xf32, #tpu.memory_space<vmem>>, vector<2x8x8x32xf32>
    %77 = vector.shape_cast %76 : vector<2x8x8x32xf32> to vector<128x32xf32>
    %78 = arith.truncf %77 : vector<128x32xf32> to vector<128x32xbf16>
    %c8 = arith.constant 8 : index
    %c0_83 = arith.constant 0 : index
    %c0_84 = arith.constant 0 : index
    %79 = vector.load %arg4[%c8, %c0_83, %c0_84] : memref<9x32x32xbf16, #tpu.memory_space<vmem>>, vector<1x32x32xbf16>
    %80 = vector.shape_cast %79 : vector<1x32x32xbf16> to vector<32x32xbf16>
    %cst_85 = arith.constant dense<0.000000e+00> : vector<128x32xf32>
    %81 = tpu.matmul %78, %80, %cst_85 {dimension_numbers = #tpu.dot_dimension_numbers<[1], [0], [0], [1], [0, 0, 1, 1], [], []>} : vector<128x32xbf16>, vector<32x32xbf16>, vector<128x32xf32> -> vector<128x32xf32>
    %82 = arith.addf %75, %81 : vector<128x32xf32>
    %c0_86 = arith.constant 0 : index
    %c0_87 = arith.constant 0 : index
    %c0_88 = arith.constant 0 : index
    %83 = vector.load %arg5[%c0_86, %c0_87, %c0_88] : memref<2x1x32xf32, #tpu.memory_space<vmem>>, vector<1x1x32xf32>
    %84 = vector.shape_cast %83 : vector<1x1x32xf32> to vector<1x32xf32>
    %85 = vector.broadcast %84 : vector<1x32xf32> to vector<128x32xf32>
    %86 = arith.mulf %82, %85 : vector<128x32xf32>
    %c1_89 = arith.constant 1 : index
    %c0_90 = arith.constant 0 : index
    %c0_91 = arith.constant 0 : index
    %87 = vector.load %arg5[%c1_89, %c0_90, %c0_91] : memref<2x1x32xf32, #tpu.memory_space<vmem>>, vector<1x1x32xf32>
    %88 = vector.shape_cast %87 : vector<1x1x32xf32> to vector<1x32xf32>
    %89 = vector.broadcast %88 : vector<1x32xf32> to vector<128x32xf32>
    %90 = arith.addf %86, %89 : vector<128x32xf32>
    %cst_92 = arith.constant 0.000000e+00 : f32
    %91 = vector.broadcast %cst_92 : f32 to vector<128x32xf32>
    %92 = arith.maximumf %90, %91 : vector<128x32xf32>
    %93 = arith.truncf %92 : vector<128x32xf32> to vector<128x32xbf16>
    %c0_93 = arith.constant 0 : index
    %c0_94 = arith.constant 0 : index
    %94 = vector.load %arg6[%c0_93, %c0_94] : memref<32x128xbf16, #tpu.memory_space<vmem>>, vector<32x128xbf16>
    %cst_95 = arith.constant dense<0.000000e+00> : vector<128x128xf32>
    %95 = tpu.matmul %93, %94, %cst_95 {dimension_numbers = #tpu.dot_dimension_numbers<[1], [0], [0], [1], [0, 0, 1, 1], [], []>} : vector<128x32xbf16>, vector<32x128xbf16>, vector<128x128xf32> -> vector<128x128xf32>
    %c0_96 = arith.constant 0 : index
    %c0_97 = arith.constant 0 : index
    %c0_98 = arith.constant 0 : index
    %96 = vector.load %arg7[%c0_96, %c0_97, %c0_98] : memref<2x1x128xf32, #tpu.memory_space<vmem>>, vector<1x1x128xf32>
    %97 = vector.shape_cast %96 : vector<1x1x128xf32> to vector<1x128xf32>
    %98 = vector.broadcast %97 : vector<1x128xf32> to vector<128x128xf32>
    %99 = arith.mulf %95, %98 : vector<128x128xf32>
    %c1_99 = arith.constant 1 : index
    %c0_100 = arith.constant 0 : index
    %c0_101 = arith.constant 0 : index
    %100 = vector.load %arg7[%c1_99, %c0_100, %c0_101] : memref<2x1x128xf32, #tpu.memory_space<vmem>>, vector<1x1x128xf32>
    %101 = vector.shape_cast %100 : vector<1x1x128xf32> to vector<1x128xf32>
    %102 = vector.broadcast %101 : vector<1x128xf32> to vector<128x128xf32>
    %103 = arith.addf %99, %102 : vector<128x128xf32>
    %c0_102 = arith.constant 0 : index
    %c0_103 = arith.constant 0 : index
    %c0_104 = arith.constant 0 : index
    %c0_105 = arith.constant 0 : index
    %104 = tpu.strided_load %arg1[%c0_102, %c0_103, %c0_104, %c0_105] {strides = array<i32: 1, 2, 2, 1>} : memref<2x16x16x64xf32, #tpu.memory_space<vmem>>, vector<2x8x8x64xf32>
    %105 = vector.shape_cast %104 : vector<2x8x8x64xf32> to vector<128x64xf32>
    %106 = arith.truncf %105 : vector<128x64xf32> to vector<128x64xbf16>
    %c0_106 = arith.constant 0 : index
    %c0_107 = arith.constant 0 : index
    %107 = vector.load %arg8[%c0_106, %c0_107] : memref<64x128xbf16, #tpu.memory_space<vmem>>, vector<64x128xbf16>
    %cst_108 = arith.constant dense<0.000000e+00> : vector<128x128xf32>
    %108 = tpu.matmul %106, %107, %cst_108 {dimension_numbers = #tpu.dot_dimension_numbers<[1], [0], [0], [1], [0, 0, 1, 1], [], []>} : vector<128x64xbf16>, vector<64x128xbf16>, vector<128x128xf32> -> vector<128x128xf32>
    %c0_109 = arith.constant 0 : index
    %c0_110 = arith.constant 0 : index
    %c0_111 = arith.constant 0 : index
    %109 = vector.load %arg9[%c0_109, %c0_110, %c0_111] : memref<2x1x128xf32, #tpu.memory_space<vmem>>, vector<1x1x128xf32>
    %110 = vector.shape_cast %109 : vector<1x1x128xf32> to vector<1x128xf32>
    %111 = vector.broadcast %110 : vector<1x128xf32> to vector<128x128xf32>
    %112 = arith.mulf %108, %111 : vector<128x128xf32>
    %c1_112 = arith.constant 1 : index
    %c0_113 = arith.constant 0 : index
    %c0_114 = arith.constant 0 : index
    %113 = vector.load %arg9[%c1_112, %c0_113, %c0_114] : memref<2x1x128xf32, #tpu.memory_space<vmem>>, vector<1x1x128xf32>
    %114 = vector.shape_cast %113 : vector<1x1x128xf32> to vector<1x128xf32>
    %115 = vector.broadcast %114 : vector<1x128xf32> to vector<128x128xf32>
    %116 = arith.addf %112, %115 : vector<128x128xf32>
    %117 = arith.addf %103, %116 : vector<128x128xf32>
    %cst_115 = arith.constant 0.000000e+00 : f32
    %118 = vector.broadcast %cst_115 : f32 to vector<128x128xf32>
    %119 = arith.maximumf %117, %118 : vector<128x128xf32>
    %120 = vector.shape_cast %119 : vector<128x128xf32> to vector<2x8x8x128xf32>
    %c0_116 = arith.constant 0 : index
    %c0_117 = arith.constant 0 : index
    %c0_118 = arith.constant 0 : index
    %c0_119 = arith.constant 0 : index
    %121 = vector.load %arg10[%c0_116, %c0_117, %c0_118, %c0_119] : memref<2x8x8x128xf32, #tpu.memory_space<vmem>>, vector<2x8x8x128xf32>
    tpu.vector_store %arg10[%c0_116, %c0_117, %c0_118, %c0_119], %120 {strides = array<i32>} : memref<2x8x8x128xf32, #tpu.memory_space<vmem>>, vector<2x8x8x128xf32>,
    return
  }
  func.func @transform_0(%arg0: i32) -> (i32, i32, i32, i32) {
    %c0_i32 = arith.constant 0 : i32
    %c0_i32_0 = arith.constant 0 : i32
    %c0_i32_1 = arith.constant 0 : i32
    %c0_i32_2 = arith.constant 0 : i32
    %c0_i32_3 = arith.constant 0 : i32
    return %c0_i32, %c0_i32_0, %c0_i32_1, %c0_i32_2 : i32, i32, i32, i32
  }
  func.func @transform_1(%arg0: i32) -> (i32, i32) {
    %c0_i32 = arith.constant 0 : i32
    %c0_i32_0 = arith.constant 0 : i32
    %c0_i32_1 = arith.constant 0 : i32
    return %c0_i32, %c0_i32_0 : i32, i32
  }
  func.func @transform_2(%arg0: i32) -> (i32, i32, i32) {
    %c0_i32 = arith.constant 0 : i32
    %c0_i32_0 = arith.constant 0 : i32
    %c0_i32_1 = arith.constant 0 : i32
    %c0_i32_2 = arith.constant 0 : i32
    return %c0_i32, %c0_i32_0, %c0_i32_1 : i32, i32, i32
  }
  func.func @transform_3(%arg0: i32) -> (i32, i32, i32) {
    %c0_i32 = arith.constant 0 : i32
    %c0_i32_0 = arith.constant 0 : i32
    %c0_i32_1 = arith.constant 0 : i32
    %c0_i32_2 = arith.constant 0 : i32
    return %c0_i32, %c0_i32_0, %c0_i32_1 : i32, i32, i32
  }
  func.func @transform_4(%arg0: i32) -> (i32, i32, i32) {
    %c0_i32 = arith.constant 0 : i32
    %c0_i32_0 = arith.constant 0 : i32
    %c0_i32_1 = arith.constant 0 : i32
    %c0_i32_2 = arith.constant 0 : i32
    return %c0_i32, %c0_i32_0, %c0_i32_1 : i32, i32, i32
  }
  func.func @transform_5(%arg0: i32) -> (i32, i32) {
    %c0_i32 = arith.constant 0 : i32
    %c0_i32_0 = arith.constant 0 : i32
    %c0_i32_1 = arith.constant 0 : i32
    return %c0_i32, %c0_i32_0 : i32, i32
  }
  func.func @transform_6(%arg0: i32) -> (i32, i32, i32) {
    %c0_i32 = arith.constant 0 : i32
    %c0_i32_0 = arith.constant 0 : i32
    %c0_i32_1 = arith.constant 0 : i32
    %c0_i32_2 = arith.constant 0 : i32
    return %c0_i32, %c0_i32_0, %c0_i32_1 : i32, i32, i32
  }
  func.func @transform_7(%arg0: i32) -> (i32, i32) {
    %c0_i32 = arith.constant 0 : i32
    %c0_i32_0 = arith.constant 0 : i32
    %c0_i32_1 = arith.constant 0 : i32
    return %c0_i32, %c0_i32_0 : i32, i32
  }
  func.func @transform_8(%arg0: i32) -> (i32, i32, i32) {
    %c0_i32 = arith.constant 0 : i32
    %c0_i32_0 = arith.constant 0 : i32
    %c0_i32_1 = arith.constant 0 : i32
    %c0_i32_2 = arith.constant 0 : i32
    return %c0_i32, %c0_i32_0, %c0_i32_1 : i32, i32, i32
  }
  func.func @transform_9(%arg0: i32) -> (i32, i32, i32, i32) {
    %c0_i32 = arith.constant 0 : i32
    %c0_i32_0 = arith.constant 0 : i32
    %c0_i32_1 = arith.constant 0 : i32
    %c0_i32_2 = arith.constant 0 : i32
    %c0_i32_3 = arith.constant 0 : i32
    return %c0_i32, %c0_i32_0, %c0_i32_1, %c0_i32_2 : i32, i32, i32, i32
  }
}

</mosaic_0001>

<bundles_post_ra>
// kernel: bottleneck_forward.1
= control target key start
LH: loop header
LB: loop body
LE: loop exit
PB: predicated region body
PF: predicated region fallthrough
CT: control target
= control target key end

     0   :  { %14 = vsyncpa [#allocation4], 0  ;;  %s4013_s0 = inlined_call_operand.hbm [shape: f32[2,16,16,64], index: 0, kind: input, shape index: {}]   ;;  %s4014_s1 = inlined_call_operand.vmem [shape: bf16[64,32], index: 1, kind: input, shape index: {}]   ;;  %s4015_s2 = inlined_call_operand.vmem [shape: f32[2,1,32], index: 2, kind: input, shape index: {}]   ;;  %s4016_s3 = inlined_call_operand.hbm [shape: bf16[9,32,32], index: 3, kind: input, shape index: {}]   ;;  %s4017_s4 = inlined_call_operand.vmem [shape: f32[2,1,32], index: 4, kind: input, shape index: {}]   ;;  %s4018_s5 = inlined_call_operand.vmem [shape: bf16[32,128], index: 5, kind: input, shape index: {}]   ;;  %s4019_s6 = inlined_call_operand.vmem [shape: f32[2,1,128], index: 6, kind: input, shape index: {}]   ;;  %s4020_s7 = inlined_call_operand.vmem [shape: bf16[64,128], index: 7, kind: input, shape index: {}]   ;;  %s4021_s8 = inlined_call_operand.vmem [shape: f32[2,1,128], index: 8, kind: input, shape index: {}]   ;;  %s4022_s9 = inlined_call_operand.hbm [shape: f32[2,8,8,128], index: 9, kind: output, shape index: {}]  }
   0x1   :  { %15 = vsyncpa [#allocation7], 0 }
   0x2   :  { %16 = vsyncpa [#allocation5], 0  ;;  %s21_s11 = sshll.u32 %s4013_s0, 4  ;;  %s3025_s12 = smov [#allocation3]   ;;  %s22_s11 = int_to_ptr.hbm [resolvable:$true] %s21_s11 }
   0x3   :  { %s23_s13 = sshll.u32 %s3025_s12, 4  ;;  %s38_s16 = sshll.u32 %s4016_s3, 4  ;;  %s24_s13 = int_to_ptr.vmem [resolvable:$true] %s23_s13  ;;  %s39_s16 = int_to_ptr.hbm [resolvable:$true] %s38_s16 }
   0x4   :  { %s3026_s17 = smov 128   ;;  %s3027_s18 = smov 8  }
   0x5   :  { %29 = dma.hbm_to_vmem [thread:$0]  %s22_s11, 8192, %s24_s13, [#allocation4], %s3026_s17, %s3026_s17, %s3027_s18  }
   0x6   :  { %s3028_s19 = smov [#allocation6]   ;;  %s3029_s21 = smov 64  }
   0x7   :  { %s40_s20 = sshll.u32 %s3028_s19, 4  ;;  %s3030_s0 = smov 4   ;;  %s41_s20 = int_to_ptr.vmem [resolvable:$true] %s40_s20 }
   0x8   :  { %46 = dma.hbm_to_vmem [thread:$0]  %s39_s16, 2304, %s41_s20, [#allocation7], %s3029_s21, %s3029_s21, %s3030_s0  }
   0x9   :  { %3019 = dma.done.wait [#allocation4], 8192  }
   0xa   :  { %3020 = vsyncadd [#allocation4], 4294959104 }
   0xb   :  { %3021 = dma.done.wait [#allocation7], 2304  }
   0xc   :  { %3022 = vsyncadd [#allocation7], 4294964992  ;;  %vm661_vm0 = vcmask 261120   ;;  %vm664_vm1 = vcmask 254976   ;;  %v3031_v0 = vmov 0.0   ;;  %v2896_v1 = vld [vmem:[%s4014_s1 + $0x18] sm:$0xff] }
   0xd   :  { %662 = vst.msk [vmem:[#allocation2] sm:$0xff] %vm661_vm0, %v3031_v0  ;;  %295 = vmatpush.bf16.msra.mxu0 %v2896_v1  ;;  %v2895_v2 = vld [vmem:[%s4014_s1 + $0x10] sm:$0xff]  ;;  %2921 = vmatpush.bf16.msra.mxu3 %v2896_v1  ;;  %v2894_v3 = vld [vmem:[%s4014_s1 + $0x8] sm:$0xff]  ;;  %v2893_v4 = vld [vmem:[%s4014_s1] sm:$0xff]  ;;  %vm194_vm2 = vcmask 523264  }
   0xe   :  { %663 = vst.msk [vmem:[#allocation2 + $0x8] sm:$0xff] %vm661_vm0, %v3031_v0  ;;  %v66_v5 = vld [vmem:[#allocation3] sm:$0xff]  ;;  %v67_v6 = vld [vmem:[#allocation3 + $0x8] sm:$0xff]  ;;  %v68_v8 = vld [vmem:[#allocation3 + $0x10] sm:$0xff] }
   0xf   :  { %665 = vst.msk [vmem:[#allocation2 + $0x10] sm:$0x3] %vm664_vm1, %v3031_v0  ;;  %v130_v7 = vpack.c.bf16 %v67_v6, %v66_v5  ;;  %v69_v9 = vld [vmem:[#allocation3 + $0x18] sm:$0xff]  ;;  %v70_v11 = vld [vmem:[#allocation3 + $0x20] sm:$0xff]  ;;  %v71_v12 = vld [vmem:[#allocation3 + $0x28] sm:$0xff] }
  0x10   :  { %666 = vst.msk [vmem:[#allocation2 + $0x18] sm:$0xff] %vm661_vm0, %v3031_v0  ;;  %v131_v10 = vpack.c.bf16 %v69_v9, %v68_v8  ;;  %v132_v13 = vpack.c.bf16 %v71_v12, %v70_v11  ;;  %v72_v14 = vld [vmem:[#allocation3 + $0x30] sm:$0xff]  ;;  %v73_v15 = vld [vmem:[#allocation3 + $0x38] sm:$0xff]  ;;  %v74_v17 = vld [vmem:[#allocation3 + $0x40] sm:$0xff] }
  0x11   :  { %667 = vst.msk [vmem:[#allocation2 + $0x20] sm:$0xff] %vm661_vm0, %v3031_v0  ;;  %296 = vmatpush.bf16.msra.mxu0 %v2895_v2  ;;  %2922 = vmatpush.bf16.msra.mxu3 %v2895_v2  ;;  %v133_v16 = vpack.c.bf16 %v73_v15, %v72_v14  ;;  %v75_v18 = vld [vmem:[#allocation3 + $0x48] sm:$0xff]  ;;  %v76_v20 = vld [vmem:[#allocation3 + $0x50] sm:$0xff]  ;;  %v77_v21 = vld [vmem:[#allocation3 + $0x58] sm:$0xff] }
  0x12   :  { %668 = vst.msk [vmem:[#allocation2 + $0x28] sm:$0x3] %vm664_vm1, %v3031_v0  ;;  %v134_v19 = vpack.c.bf16 %v75_v18, %v74_v17  ;;  %v135_v22 = vpack.c.bf16 %v77_v21, %v76_v20  ;;  %v78_v23 = vld [vmem:[#allocation3 + $0x60] sm:$0xff]  ;;  %v79_v24 = vld [vmem:[#allocation3 + $0x68] sm:$0xff]  ;;  %v80_v26 = vld [vmem:[#allocation3 + $0x70] sm:$0xff] }
  0x13   :  { %669 = vst.msk [vmem:[#allocation2 + $0x30] sm:$0xff] %vm661_vm0, %v3031_v0  ;;  %v136_v25 = vpack.c.bf16 %v79_v24, %v78_v23  ;;  %v81_v27 = vld [vmem:[#allocation3 + $0x78] sm:$0xff]  ;;  %v82_v29 = vld [vmem:[#allocation3 + $0x80] sm:$0xff]  ;;  %v83_v30 = vld [vmem:[#allocation3 + $0x88] sm:$0xff] }
  0x14   :  { %670 = vst.msk [vmem:[#allocation2 + $0x38] sm:$0xff] %vm661_vm0, %v3031_v0  ;;  %v137_v28 = vpack.c.bf16 %v81_v27, %v80_v26  ;;  %v3319_v31 = vld [vmem:[%s4015_s2] ss:$0 sm:$0xff]  ;;  %v3324_v32 = vld [vmem:[%s4015_s2 + $0x1] ss:$0 sm:$0xff]  ;;  %v138_v33 = vpack.c.bf16 %v83_v30, %v82_v29  ;;  %v2900_v35 = vld [vmem:[#allocation6 + $0x18] sm:$0xff] }
  0x15   :  { %671 = vst.msk [vmem:[#allocation2 + $0x40] sm:$0x3] %vm664_vm1, %v3031_v0  ;;  %297 = vmatpush.bf16.msra.mxu0 %v2894_v3  ;;  %2923 = vmatpush.bf16.msra.mxu3 %v2894_v3  ;;  %v3326_v36 = vld [vmem:[#allocation6 + $0x8] sm:$0xff]  ;;  %v2899_v39 = vld [vmem:[#allocation6 + $0x10] sm:$0xff]  ;;  %v3332_v40 = vld [vmem:[#allocation6] sm:$0xff] }
  0x16   :  { %672 = vst.msk [vmem:[#allocation2 + $0x48] sm:$0xff] %vm661_vm0, %v3031_v0  ;;  %966 = vmatpush.bf16.msra.mxu1 %v2900_v35  ;;  %1051 = vmatpush.bf16.msra.mxu2 %v3326_v36  ;;  %v84_v45 = vld [vmem:[#allocation3 + $0x90] sm:$0xff]  ;;  %v85_v46 = vld [vmem:[#allocation3 + $0x98] sm:$0xff]  ;;  %v86_v56 = vld [vmem:[#allocation3 + $0xa0] sm:$0xff] }
  0x17   :  { %673 = vst.msk [vmem:[#allocation2 + $0x50] sm:$0xff] %vm661_vm0, %v3031_v0  ;;  %v139_v48 = vpack.c.bf16 %v85_v46, %v84_v45  ;;  %v87_v57 = vld [vmem:[#allocation3 + $0xa8] sm:$0xff]  ;;  %v88_v9 = vld [vmem:[#allocation3 + $0xb0] sm:$0xff]  ;;  %v90_v20 = vld [vmem:[#allocation3 + $0xc0] sm:$0xff] }
  0x18   :  { %674 = vst.msk [vmem:[#allocation2 + $0x58] sm:$0x3] %vm664_vm1, %v3031_v0  ;;  %v140_v59 = vpack.c.bf16 %v87_v57, %v86_v56  ;;  %v880_v63 = vld [vmem:[#allocation2 + $0x1] ss:$2 sm:$0xff] }
  0x19   :  { %675 = vst.msk [vmem:[#allocation2 + $0x60] sm:$0xff] %vm661_vm0, %v3031_v0  ;;  %298 = vmatpush.bf16.msra.mxu0 %v2893_v4  ;;  %2924 = vmatpush.bf16.msra.mxu3 %v2893_v4  ;;  %v91_v21 = vld [vmem:[#allocation3 + $0xc8] sm:$0xff]  ;;  %v94_v46 = vld [vmem:[#allocation3 + $0xe0] sm:$0xff] }
  0x1a   :  { %676 = vst.msk [vmem:[#allocation2 + $0x68] sm:$0xff] %vm661_vm0, %v3031_v0  ;;  %967 = vmatpush.bf16.msra.mxu1 %v2899_v39  ;;  %1052 = vmatpush.bf16.msra.mxu2 %v3332_v40  ;;  %v142_v23 = vpack.c.bf16 %v91_v21, %v90_v20  ;;  %v100_v21 = vld [vmem:[#allocation3 + $0x110] sm:$0xff] }
  0x1b   :  { %677 = vst.msk [vmem:[#allocation2 + $0x70] sm:$0x3] %vm664_vm1, %v3031_v0 }
  0x1c   :  { %678 = vst.msk [vmem:[#allocation2 + $0x78] sm:$0xff] %vm661_vm0, %v3031_v0  ;;  %2673 = vmatmul.msk.bf16.vlgmr.msra.gmra.mxu0 %vm194_vm2, %v130_v7 }
  0x1d   :  { %679 = vst.msk [vmem:[#allocation2 + $0x80] sm:$0xff] %vm661_vm0, %v3031_v0  ;;  %2925 = vmatpush.bf16.msrb.mxu3 %v2900_v35 }
  0x1e   :  { %680 = vst.msk [vmem:[#allocation2 + $0x88] sm:$0x3] %vm664_vm1, %v3031_v0 }
  0x1f   :  { %681 = vst.msk [vmem:[#allocation2 + $0x90] sm:$0xff] %vm661_vm0, %v3031_v0 }
  0x20   :  { %682 = vst.msk [vmem:[#allocation2 + $0x98] sm:$0xff] %vm661_vm0, %v3031_v0 }
  0x21   :  { %683 = vst.msk [vmem:[#allocation2 + $0xa0] sm:$0x3] %vm664_vm1, %v3031_v0  ;;  %2926 = vmatpush.bf16.msrb.mxu3 %v2899_v39 }
  0x22   :  { %684 = vst.msk [vmem:[#allocation2 + $0xa8] sm:$0xff] %vm661_vm0, %v3031_v0 }
  0x23   :  { %685 = vst.msk [vmem:[#allocation2 + $0xb0] sm:$0xff] %vm661_vm0, %v3031_v0 }
  0x24   :  { %686 = vst.msk [vmem:[#allocation2 + $0xb8] sm:$0x3] %vm664_vm1, %v3031_v0 }
  0x25   :  { %687 = vst.msk [vmem:[#allocation2 + $0xc0] sm:$0xff] %vm661_vm0, %v3031_v0 }
  0x26   :  { %688 = vst.msk [vmem:[#allocation2 + $0xc8] sm:$0xff] %vm661_vm0, %v3031_v0 }
  0x27   :  { %689 = vst.msk [vmem:[#allocation2 + $0xd0] sm:$0x3] %vm664_vm1, %v3031_v0 }
  0x28   :  { %690 = vst.msk [vmem:[#allocation2 + $0xd8] sm:$0xff] %vm661_vm0, %v3031_v0 }
  0x29   :  { %691 = vst.msk [vmem:[#allocation2 + $0xe0] sm:$0xff] %vm661_vm0, %v3031_v0 }
  0x2a   :  { %692 = vst.msk [vmem:[#allocation2 + $0xe8] sm:$0x3] %vm664_vm1, %v3031_v0 }
  0x2b   :  { %693 = vst.msk [vmem:[#allocation2 + $0xf0] sm:$0xff] %vm661_vm0, %v3031_v0 }
  0x2c   :  { %694 = vst.msk [vmem:[#allocation2 + $0xf8] sm:$0xff] %vm661_vm0, %v3031_v0  ;;  %2674 = vmatmul.msk.bf16.gmra.mxu0 %vm194_vm2, %v131_v10  ;;  %v89_v10 = vld [vmem:[#allocation3 + $0xb8] sm:$0xff] }
  0x2d   :  { %695 = vst.msk [vmem:[#allocation2 + $0x100] sm:$0x3] %vm664_vm1, %v3031_v0  ;;  %v141_v12 = vpack.c.bf16 %v89_v10, %v88_v9  ;;  %v98_v10 = vld [vmem:[#allocation3 + $0x100] sm:$0xff] }
  0x2e   :  { %696 = vst.msk [vmem:[#allocation2 + $0x108] sm:$0xff] %vm661_vm0, %v3031_v0 }
  0x2f   :  { %697 = vst.msk [vmem:[#allocation2 + $0x110] sm:$0xff] %vm661_vm0, %v3031_v0 }
  0x30   :  { %698 = vst.msk [vmem:[#allocation2 + $0x118] sm:$0x3] %vm664_vm1, %v3031_v0 }
  0x31   :  { %699 = vst.msk [vmem:[#allocation2 + $0x120] sm:$0xff] %vm661_vm0, %v3031_v0 }
  0x32   :  { %700 = vst.msk [vmem:[#allocation2 + $0x128] sm:$0xff] %vm661_vm0, %v3031_v0 }
  0x33   :  { %701 = vst.msk [vmem:[#allocation2 + $0x130] sm:$0x3] %vm664_vm1, %v3031_v0 }
  0x34   :  { %702 = vst.msk [vmem:[#allocation2 + $0x138] sm:$0xff] %vm661_vm0, %v3031_v0 }
  0x35   :  { %703 = vst.msk [vmem:[#allocation2 + $0x140] sm:$0xff] %vm661_vm0, %v3031_v0 }
  0x36   :  { %704 = vst.msk [vmem:[#allocation2 + $0x148] sm:$0x3] %vm664_vm1, %v3031_v0 }
  0x37   :  { %705 = vst.msk [vmem:[#allocation2 + $0x150] sm:$0xff] %vm661_vm0, %v3031_v0 }
  0x38   :  { %706 = vst.msk [vmem:[#allocation2 + $0x158] sm:$0xff] %vm661_vm0, %v3031_v0 }
  0x39   :  { %707 = vst.msk [vmem:[#allocation2 + $0x160] sm:$0x3] %vm664_vm1, %v3031_v0 }
  0x3a   :  { %708 = vst.msk [vmem:[#allocation2 + $0x168] sm:$0xff] %vm661_vm0, %v3031_v0 }
  0x3b   :  { %709 = vst.msk [vmem:[#allocation2 + $0x170] sm:$0xff] %vm661_vm0, %v3031_v0 }
  0x3c   :  { %710 = vst.msk [vmem:[#allocation2 + $0x178] sm:$0x3] %vm664_vm1, %v3031_v0  ;;  %2675 = vmatmul.msk.bf16.gmra.mxu0 %vm194_vm2, %v132_v13 }
  0x3d   :  { %711 = vst.msk [vmem:[#allocation2 + $0x180] sm:$0xff] %vm661_vm0, %v3031_v0 }
  0x3e   :  { %712 = vst.msk [vmem:[#allocation2 + $0x188] sm:$0xff] %vm661_vm0, %v3031_v0 }
  0x3f   :  { %713 = vst.msk [vmem:[#allocation2 + $0x190] sm:$0x3] %vm664_vm1, %v3031_v0 }
  0x40   :  { %717 = vst.msk [vmem:[#allocation2 + $0x1b0] sm:$0xff] %vm661_vm0, %v3031_v0 }
  0x41   :  { %718 = vst.msk [vmem:[#allocation2 + $0x1b8] sm:$0xff] %vm661_vm0, %v3031_v0 }
  0x42   :  { %719 = vst.msk [vmem:[#allocation2 + $0x1c0] sm:$0x3] %vm664_vm1, %v3031_v0 }
  0x43   :  { %720 = vst.msk [vmem:[#allocation2 + $0x1c8] sm:$0xff] %vm661_vm0, %v3031_v0 }
  0x44   :  { %721 = vst.msk [vmem:[#allocation2 + $0x1d0] sm:$0xff] %vm661_vm0, %v3031_v0 }
  0x45   :  { %722 = vst.msk [vmem:[#allocation2 + $0x1d8] sm:$0x3] %vm664_vm1, %v3031_v0 }
  0x46   :  { %723 = vst.msk [vmem:[#allocation2 + $0x1e0] sm:$0xff] %vm661_vm0, %v3031_v0 }
  0x47   :  { %724 = vst.msk [vmem:[#allocation2 + $0x1e8] sm:$0xff] %vm661_vm0, %v3031_v0 }
  0x48   :  { %725 = vst.msk [vmem:[#allocation2 + $0x1f0] sm:$0x3] %vm664_vm1, %v3031_v0 }
  0x49   :  { %726 = vst.msk [vmem:[#allocation2 + $0x1f8] sm:$0xff] %vm661_vm0, %v3031_v0 }
  0x4a   :  { %727 = vst.msk [vmem:[#allocation2 + $0x200] sm:$0xff] %vm661_vm0, %v3031_v0 }
  0x4b   :  { %728 = vst.msk [vmem:[#allocation2 + $0x208] sm:$0x3] %vm664_vm1, %v3031_v0 }
  0x4c   :  { %729 = vst.msk [vmem:[#allocation2 + $0x210] sm:$0xff] %vm661_vm0, %v3031_v0  ;;  %2676 = vmatmul.msk.bf16.gmra.mxu0 %vm194_vm2, %v133_v16 }
  0x4d   :  { %730 = vst.msk [vmem:[#allocation2 + $0x218] sm:$0xff] %vm661_vm0, %v3031_v0 }
  0x4e   :  { %731 = vst.msk [vmem:[#allocation2 + $0x220] sm:$0x3] %vm664_vm1, %v3031_v0 }
  0x4f   :  { %732 = vst.msk [vmem:[#allocation2 + $0x228] sm:$0xff] %vm661_vm0, %v3031_v0 }
  0x50   :  { %733 = vst.msk [vmem:[#allocation2 + $0x230] sm:$0xff] %vm661_vm0, %v3031_v0 }
  0x51   :  { %734 = vst.msk [vmem:[#allocation2 + $0x238] sm:$0x3] %vm664_vm1, %v3031_v0 }
  0x52   :  { %735 = vst.msk [vmem:[#allocation2 + $0x240] sm:$0xff] %vm661_vm0, %v3031_v0 }
  0x53   :  { %736 = vst.msk [vmem:[#allocation2 + $0x248] sm:$0xff] %vm661_vm0, %v3031_v0 }
  0x54   :  { %737 = vst.msk [vmem:[#allocation2 + $0x250] sm:$0x3] %vm664_vm1, %v3031_v0 }
  0x55   :  { %738 = vst.msk [vmem:[#allocation2 + $0x258] sm:$0xff] %vm661_vm0, %v3031_v0 }
  0x56   :  { %739 = vst.msk [vmem:[#allocation2 + $0x260] sm:$0xff] %vm661_vm0, %v3031_v0 }
  0x57   :  { %740 = vst.msk [vmem:[#allocation2 + $0x268] sm:$0x3] %vm664_vm1, %v3031_v0 }
  0x58   :  { %741 = vst.msk [vmem:[#allocation2 + $0x270] sm:$0xff] %vm661_vm0, %v3031_v0 }
  0x59   :  { %742 = vst.msk [vmem:[#allocation2 + $0x278] sm:$0xff] %vm661_vm0, %v3031_v0 }
  0x5a   :  { %743 = vst.msk [vmem:[#allocation2 + $0x280] sm:$0x3] %vm664_vm1, %v3031_v0 }
  0x5b   :  { %744 = vst.msk [vmem:[#allocation2 + $0x288] sm:$0xff] %vm661_vm0, %v3031_v0 }
  0x5c   :  { %745 = vst.msk [vmem:[#allocation2 + $0x290] sm:$0xff] %vm661_vm0, %v3031_v0  ;;  %2677 = vmatmul.msk.bf16.gmra.mxu0 %vm194_vm2, %v134_v19 }
  0x5d   :  { %746 = vst.msk [vmem:[#allocation2 + $0x298] sm:$0x3] %vm664_vm1, %v3031_v0 }
  0x5e   :  { %747 = vst.msk [vmem:[#allocation2 + $0x2a0] sm:$0xff] %vm661_vm0, %v3031_v0 }
  0x5f   :  { %748 = vst.msk [vmem:[#allocation2 + $0x2a8] sm:$0xff] %vm661_vm0, %v3031_v0 }
  0x60   :  { %749 = vst.msk [vmem:[#allocation2 + $0x2b0] sm:$0x3] %vm664_vm1, %v3031_v0 }
  0x61   :  { %750 = vst.msk [vmem:[#allocation2 + $0x2b8] sm:$0xff] %vm661_vm0, %v3031_v0 }
  0x62   :  { %751 = vst.msk [vmem:[#allocation2 + $0x2c0] sm:$0xff] %vm661_vm0, %v3031_v0 }
  0x63   :  { %752 = vst.msk [vmem:[#allocation2 + $0x2c8] sm:$0x3] %vm664_vm1, %v3031_v0 }
  0x64   :  { %753 = vst.msk [vmem:[#allocation2 + $0x2d0] sm:$0xff] %vm661_vm0, %v3031_v0 }
  0x65   :  { %754 = vst.msk [vmem:[#allocation2 + $0x2d8] sm:$0xff] %vm661_vm0, %v3031_v0 }
  0x66   :  { %755 = vst.msk [vmem:[#allocation2 + $0x2e0] sm:$0x3] %vm664_vm1, %v3031_v0 }
  0x67   :  { %756 = vst.msk [vmem:[#allocation2 + $0x2e8] sm:$0xff] %vm661_vm0, %v3031_v0 }
  0x68   :  { %757 = vst.msk [vmem:[#allocation2 + $0x2f0] sm:$0xff] %vm661_vm0, %v3031_v0 }
  0x69   :  { %758 = vst.msk [vmem:[#allocation2 + $0x2f8] sm:$0x3] %vm664_vm1, %v3031_v0 }
  0x6a   :  { %759 = vst.msk [vmem:[#allocation2 + $0x300] sm:$0xff] %vm661_vm0, %v3031_v0 }
  0x6b   :  { %760 = vst.msk [vmem:[#allocation2 + $0x308] sm:$0xff] %vm661_vm0, %v3031_v0 }
  0x6c   :  { %761 = vst.msk [vmem:[#allocation2 + $0x310] sm:$0x3] %vm664_vm1, %v3031_v0  ;;  %2678 = vmatmul.msk.bf16.gmra.mxu0 %vm194_vm2, %v135_v22 }
  0x6d   :  { %762 = vst.msk [vmem:[#allocation2 + $0x318] sm:$0xff] %vm661_vm0, %v3031_v0 }
  0x6e   :  { %763 = vst.msk [vmem:[#allocation2 + $0x320] sm:$0xff] %vm661_vm0, %v3031_v0 }
  0x6f   :  { %764 = vst.msk [vmem:[#allocation2 + $0x328] sm:$0x3] %vm664_vm1, %v3031_v0 }
  0x70   :  { %765 = vst.msk [vmem:[#allocation2 + $0x330] sm:$0xff] %vm661_vm0, %v3031_v0 }
  0x71   :  { %766 = vst.msk [vmem:[#allocation2 + $0x338] sm:$0xff] %vm661_vm0, %v3031_v0 }
  0x72   :  { %767 = vst.msk [vmem:[#allocation2 + $0x340] sm:$0x3] %vm664_vm1, %v3031_v0  ;;  %v836_v0 = vld [vmem:[#allocation2] ss:$2 sm:$0xff] }
  0x7c   :  { %2679 = vmatmul.msk.bf16.gmra.mxu0 %vm194_vm2, %v136_v25 }
  0x8c   :  { %2680 = vmatmul.msk.bf16.gmra.mxu0 %vm194_vm2, %v137_v28 }
  0x99   :  { %v300_v34 = vpop.f32.mrf.mxu0 }
  0x9a   :  { %v464_v37 = vmul.f32 %v3319_v31, %v300_v34  ;;  %v93_v34 = vld [vmem:[#allocation3 + $0xd8] sm:$0xff] }
  0x9c   :  { %v533_v38 = vadd.f32 %v3324_v32, %v464_v37  ;;  %2681 = vmatmul.msk.bf16.gmra.mxu0 %vm194_vm2, %v138_v33  ;;  %v92_v33 = vld [vmem:[#allocation3 + $0xd0] sm:$0xff] }
  0x9d   :  { %v143_v37 = vpack.c.bf16 %v93_v34, %v92_v33  ;;  %v102_v34 = vld [vmem:[#allocation3 + $0x120] sm:$0xff] }
  0x9e   :  { %v597_v41 = vmax.f32 %v533_v38, 0.0 }
  0xa0   :  { %772 = vst.msk [vmem:[#allocation2 + $0x19] sm:$0xff] %vm661_vm0, %v597_v41 }
  0xa1   :  { %v302_v42 = vpop.f32.mrf.mxu0 }
  0xa2   :  { %v465_v43 = vmul.f32 %v3319_v31, %v302_v42 }
  0xa4   :  { %v534_v44 = vadd.f32 %v3324_v32, %v465_v43 }
  0xa6   :  { %v598_v47 = vmax.f32 %v534_v44, 0.0 }
  0xa8   :  { %773 = vst.msk [vmem:[#allocation2 + $0x21] sm:$0xff] %vm661_vm0, %v598_v47  ;;  %v95_v47 = vld [vmem:[#allocation3 + $0xe8] sm:$0xff] }
  0xa9   :  { %v305_v49 = vpop.f32.mrf.mxu0 }
  0xaa   :  { %v466_v50 = vmul.f32 %v3319_v31, %v305_v49  ;;  %v144_v49 = vpack.c.bf16 %v95_v47, %v94_v46 }
  0xac   :  { %v535_v51 = vadd.f32 %v3324_v32, %v466_v50  ;;  %2682 = vmatmul.msk.bf16.gmra.mxu0 %vm194_vm2, %v139_v48 }
  0xae   :  { %v599_v52 = vmax.f32 %v535_v51, 0.0 }
  0xb0   :  { %774 = vst.msk [vmem:[#allocation2 + $0x31] sm:$0xff] %vm661_vm0, %v599_v52 }
  0xb1   :  { %v307_v53 = vpop.f32.mrf.mxu0 }
  0xb2   :  { %v467_v54 = vmul.f32 %v3319_v31, %v307_v53 }
  0xb4   :  { %v536_v55 = vadd.f32 %v3324_v32, %v467_v54 }
  0xb6   :  { %v600_v58 = vmax.f32 %v536_v55, 0.0 }
  0xb8   :  { %775 = vst.msk [vmem:[#allocation2 + $0x39] sm:$0xff] %vm661_vm0, %v600_v58 }
  0xb9   :  { %v310_v60 = vpop.f32.mrf.mxu0 }
  0xba   :  { %v468_v61 = vmul.f32 %v3319_v31, %v310_v60 }
  0xbc   :  { %v537_v62 = vadd.f32 %v3324_v32, %v468_v61  ;;  %2683 = vmatmul.msk.bf16.gmra.mxu0 %vm194_vm2, %v140_v59 }
  0xbe   :  { %v601_v1 = vmax.f32 %v537_v62, 0.0 }
  0xbf   :  { %v882_v2 = vld [vmem:[#allocation2 + $0x31] ss:$2 sm:$0xff]  ;;  %v838_v3 = vld [vmem:[#allocation2 + $0x30] ss:$2 sm:$0xff] }
  0xc0   :  { %776 = vst.msk [vmem:[#allocation2 + $0x49] sm:$0xff] %vm661_vm0, %v601_v1  ;;  %v911_v4 = vpack.c.bf16 %v882_v2, %v880_v63  ;;  %v867_v5 = vpack.c.bf16 %v838_v3, %v836_v0  ;;  %v96_v63 = vld [vmem:[#allocation3 + $0xf0] sm:$0xff]  ;;  %v97_v0 = vld [vmem:[#allocation3 + $0xf8] sm:$0xff] }
  0xc1   :  { %v312_v6 = vpop.f32.mrf.mxu0  ;;  %v145_v2 = vpack.c.bf16 %v97_v0, %v96_v63 }
  0xc2   :  { %v469_v7 = vmul.f32 %v3319_v31, %v312_v6  ;;  %2714 = vmatmul.msk.bf16.vlgmr.msra.gmra.mxu1 %vm661_vm0, %v911_v4  ;;  %2730 = vmatmul.msk.bf16.vlgmr.msra.gmra.mxu2 %vm661_vm0, %v867_v5 }
  0xc4   :  { %v538_v8 = vadd.f32 %v3324_v32, %v469_v7 }
  0xc6   :  { %v602_v11 = vmax.f32 %v538_v8, 0.0 }
  0xc8   :  { %777 = vst.msk [vmem:[#allocation2 + $0x51] sm:$0xff] %vm661_vm0, %v602_v11  ;;  %v99_v11 = vld [vmem:[#allocation3 + $0x108] sm:$0xff] }
  0xc9   :  { %v315_v13 = vpop.f32.mrf.mxu0 }
  0xca   :  { %v470_v14 = vmul.f32 %v3319_v31, %v315_v13  ;;  %v146_v13 = vpack.c.bf16 %v99_v11, %v98_v10 }
  0xcc   :  { %v539_v15 = vadd.f32 %v3324_v32, %v470_v14  ;;  %2684 = vmatmul.msk.bf16.gmra.mxu0 %vm194_vm2, %v141_v12 }
  0xce   :  { %v603_v16 = vmax.f32 %v539_v15, 0.0 }
  0xd0   :  { %778 = vst.msk [vmem:[#allocation2 + $0x61] sm:$0xff] %vm661_vm0, %v603_v16 }
  0xd1   :  { %v317_v17 = vpop.f32.mrf.mxu0 }
  0xd2   :  { %v471_v18 = vmul.f32 %v3319_v31, %v317_v17 }
  0xd4   :  { %v540_v19 = vadd.f32 %v3324_v32, %v471_v18 }
  0xd6   :  { %v604_v22 = vmax.f32 %v540_v19, 0.0 }
  0xd8   :  { %779 = vst.msk [vmem:[#allocation2 + $0x69] sm:$0xff] %vm661_vm0, %v604_v22  ;;  %v101_v22 = vld [vmem:[#allocation3 + $0x118] sm:$0xff] }
  0xd9   :  { %v320_v24 = vpop.f32.mrf.mxu0 }
  0xda   :  { %v472_v25 = vmul.f32 %v3319_v31, %v320_v24  ;;  %v147_v24 = vpack.c.bf16 %v101_v22, %v100_v21 }
  0xdc   :  { %v541_v26 = vadd.f32 %v3324_v32, %v472_v25  ;;  %2685 = vmatmul.msk.bf16.gmra.mxu0 %vm194_vm2, %v142_v23 }
  0xde   :  { %v605_v27 = vmax.f32 %v541_v26, 0.0 }
  0xdf   :  { %v884_v54 = vld [vmem:[#allocation2 + $0x61] ss:$2 sm:$0xff]  ;;  %v840_v56 = vld [vmem:[#allocation2 + $0x60] ss:$2 sm:$0xff] }
  0xe0   :  { %780 = vst.msk [vmem:[#allocation2 + $0x79] sm:$0xff] %vm661_vm0, %v605_v27 }
  0xe1   :  { %v322_v28 = vpop.f32.mrf.mxu0 }
  0xe2   :  { %v473_v29 = vmul.f32 %v3319_v31, %v322_v28 }
  0xe4   :  { %v542_v30 = vadd.f32 %v3324_v32, %v473_v29 }
  0xe6   :  { %v606_v35 = vmax.f32 %v542_v30, 0.0 }
  0xe8   :  { %781 = vst.msk [vmem:[#allocation2 + $0x81] sm:$0xff] %vm661_vm0, %v606_v35  ;;  %v103_v35 = vld [vmem:[#allocation3 + $0x128] sm:$0xff] }
  0xe9   :  { %v325_v38 = vpop.f32.mrf.mxu0 }
  0xea   :  { %v474_v39 = vmul.f32 %v3319_v31, %v325_v38  ;;  %v148_v38 = vpack.c.bf16 %v103_v35, %v102_v34 }
  0xec   :  { %v543_v41 = vadd.f32 %v3324_v32, %v474_v39  ;;  %2686 = vmatmul.msk.bf16.gmra.mxu0 %vm194_vm2, %v143_v37 }
  0xee   :  { %v607_v42 = vmax.f32 %v543_v41, 0.0 }
  0xf0   :  { %782 = vst.msk [vmem:[#allocation2 + $0x91] sm:$0xff] %vm661_vm0, %v607_v42 }
  0xf1   :  { %v327_v43 = vpop.f32.mrf.mxu0 }
  0xf2   :  { %v475_v44 = vmul.f32 %v3319_v31, %v327_v43 }
  0xf4   :  { %v544_v45 = vadd.f32 %v3324_v32, %v475_v44 }
  0xf6   :  { %v608_v48 = vmax.f32 %v544_v45, 0.0 }
  0xf8   :  { %783 = vst.msk [vmem:[#allocation2 + $0x99] sm:$0xff] %vm661_vm0, %v608_v48 }
  0xf9   :  { %v330_v50 = vpop.f32.mrf.mxu0 }
  0xfa   :  { %v476_v51 = vmul.f32 %v3319_v31, %v330_v50 }
  0xfc   :  { %v545_v52 = vadd.f32 %v3324_v32, %v476_v51  ;;  %2687 = vmatmul.msk.bf16.gmra.mxu0 %vm194_vm2, %v144_v49 }
  0xfe   :  { %v609_v53 = vmax.f32 %v545_v52, 0.0 }
  0xff   :  { %v886_v55 = vld [vmem:[#allocation2 + $0x91] ss:$2 sm:$0xff]  ;;  %v842_v57 = vld [vmem:[#allocation2 + $0x90] ss:$2 sm:$0xff] }
 0x100   :  { %784 = vst.msk [vmem:[#allocation2 + $0xa9] sm:$0xff] %vm661_vm0, %v609_v53  ;;  %v912_v58 = vpack.c.bf16 %v886_v55, %v884_v54  ;;  %v868_v59 = vpack.c.bf16 %v842_v57, %v840_v56  ;;  %v104_v55 = vld [vmem:[#allocation3 + $0x130] sm:$0xff]  ;;  %v105_v56 = vld [vmem:[#allocation3 + $0x138] sm:$0xff] }
 0x101   :  { %v332_v60 = vpop.f32.mrf.mxu0 }
 0x102   :  { %v477_v61 = vmul.f32 %v3319_v31, %v332_v60  ;;  %2715 = vmatmul.msk.bf16.gmra.mxu1 %vm661_vm0, %v912_v58  ;;  %2731 = vmatmul.msk.bf16.gmra.mxu2 %vm661_vm0, %v868_v59  ;;  %v149_v59 = vpack.c.bf16 %v105_v56, %v104_v55 }
 0x104   :  { %v546_v62 = vadd.f32 %v3324_v32, %v477_v61 }
 0x106   :  { %v610_v1 = vmax.f32 %v546_v62, 0.0 }
 0x108   :  { %785 = vst.msk [vmem:[#allocation2 + $0xb1] sm:$0xff] %vm661_vm0, %v610_v1 }
 0x109   :  { %v335_v3 = vpop.f32.mrf.mxu0 }
 0x10a   :  { %v478_v4 = vmul.f32 %v3319_v31, %v335_v3  ;;  %v106_v3 = vld [vmem:[#allocation3 + $0x140] sm:$0xff] }
 0x10c   :  { %v547_v5 = vadd.f32 %v3324_v32, %v478_v4  ;;  %2688 = vmatmul.msk.bf16.gmra.mxu0 %vm194_vm2, %v145_v2  ;;  %v107_v4 = vld [vmem:[#allocation3 + $0x148] sm:$0xff] }
 0x10e   :  { %v611_v6 = vmax.f32 %v547_v5, 0.0 }
 0x110   :  { %786 = vst.msk [vmem:[#allocation2 + $0xc1] sm:$0xff] %vm661_vm0, %v611_v6  ;;  %v150_v6 = vpack.c.bf16 %v107_v4, %v106_v3 }
 0x111   :  { %v337_v7 = vpop.f32.mrf.mxu0 }
 0x112   :  { %v479_v8 = vmul.f32 %v3319_v31, %v337_v7 }
 0x114   :  { %v548_v9 = vadd.f32 %v3324_v32, %v479_v8 }
 0x116   :  { %v612_v12 = vmax.f32 %v548_v9, 0.0 }
 0x118   :  { %787 = vst.msk [vmem:[#allocation2 + $0xc9] sm:$0xff] %vm661_vm0, %v612_v12 }
 0x119   :  { %v340_v14 = vpop.f32.mrf.mxu0 }
 0x11a   :  { %v480_v15 = vmul.f32 %v3319_v31, %v340_v14  ;;  %v108_v14 = vld [vmem:[#allocation3 + $0x150] sm:$0xff] }
 0x11c   :  { %v549_v16 = vadd.f32 %v3324_v32, %v480_v15  ;;  %2689 = vmatmul.msk.bf16.gmra.mxu0 %vm194_vm2, %v146_v13  ;;  %v109_v15 = vld [vmem:[#allocation3 + $0x158] sm:$0xff] }
 0x11e   :  { %v613_v17 = vmax.f32 %v549_v16, 0.0 }
 0x11f   :  { %v888_v44 = vld [vmem:[#allocation2 + $0xc1] ss:$2 sm:$0xff]  ;;  %v844_v46 = vld [vmem:[#allocation2 + $0xc0] ss:$2 sm:$0xff] }
 0x120   :  { %788 = vst.msk [vmem:[#allocation2 + $0xd9] sm:$0xff] %vm661_vm0, %v613_v17  ;;  %v151_v17 = vpack.c.bf16 %v109_v15, %v108_v14 }
 0x121   :  { %v342_v18 = vpop.f32.mrf.mxu0 }
 0x122   :  { %v481_v19 = vmul.f32 %v3319_v31, %v342_v18 }
 0x124   :  { %v550_v20 = vadd.f32 %v3324_v32, %v481_v19 }
 0x126   :  { %v614_v23 = vmax.f32 %v550_v20, 0.0 }
 0x128   :  { %789 = vst.msk [vmem:[#allocation2 + $0xe1] sm:$0xff] %vm661_vm0, %v614_v23 }
 0x129   :  { %v345_v25 = vpop.f32.mrf.mxu0 }
 0x12a   :  { %v482_v26 = vmul.f32 %v3319_v31, %v345_v25  ;;  %v110_v25 = vld [vmem:[#allocation3 + $0x160] sm:$0xff] }
 0x12c   :  { %v551_v27 = vadd.f32 %v3324_v32, %v482_v26  ;;  %2690 = vmatmul.msk.bf16.gmra.mxu0 %vm194_vm2, %v147_v24  ;;  %v111_v26 = vld [vmem:[#allocation3 + $0x168] sm:$0xff] }
 0x12e   :  { %v615_v28 = vmax.f32 %v551_v27, 0.0 }
 0x130   :  { %790 = vst.msk [vmem:[#allocation2 + $0xf1] sm:$0xff] %vm661_vm0, %v615_v28  ;;  %v152_v28 = vpack.c.bf16 %v111_v26, %v110_v25  ;;  %v119_v25 = vld [vmem:[#allocation3 + $0x1a8] sm:$0xff] }
 0x131   :  { %v347_v29 = vpop.f32.mrf.mxu0 }
 0x132   :  { %v483_v30 = vmul.f32 %v3319_v31, %v347_v29 }
 0x134   :  { %v552_v33 = vadd.f32 %v3324_v32, %v483_v30 }
 0x136   :  { %v616_v37 = vmax.f32 %v552_v33, 0.0 }
 0x138   :  { %791 = vst.msk [vmem:[#allocation2 + $0xf9] sm:$0xff] %vm661_vm0, %v616_v37 }
 0x139   :  { %v350_v39 = vpop.f32.mrf.mxu0 }
 0x13a   :  { %v484_v41 = vmul.f32 %v3319_v31, %v350_v39 }
 0x13c   :  { %v553_v42 = vadd.f32 %v3324_v32, %v484_v41  ;;  %2691 = vmatmul.msk.bf16.gmra.mxu0 %vm194_vm2, %v148_v38 }
 0x13e   :  { %v617_v43 = vmax.f32 %v553_v42, 0.0 }
 0x13f   :  { %v890_v45 = vld [vmem:[#allocation2 + $0xf1] ss:$2 sm:$0xff]  ;;  %v846_v47 = vld [vmem:[#allocation2 + $0xf0] ss:$2 sm:$0xff]  ;;  %v969_v53 = vpop.f32.mrf.mxu1 }
 0x140   :  { %792 = vst.msk [vmem:[#allocation2 + $0x109] sm:$0xff] %vm661_vm0, %v617_v43  ;;  %v913_v48 = vpack.c.bf16 %v890_v45, %v888_v44  ;;  %v869_v49 = vpack.c.bf16 %v846_v47, %v844_v46 }
 0x141   :  { %v352_v50 = vpop.f32.mrf.mxu0 }
 0x142   :  { %v485_v51 = vmul.f32 %v3319_v31, %v352_v50  ;;  %2716 = vmatmul.msk.bf16.gmra.mxu1 %vm661_vm0, %v913_v48  ;;  %2732 = vmatmul.msk.bf16.gmra.mxu2 %vm661_vm0, %v869_v49  ;;  %v112_v50 = vld [vmem:[#allocation3 + $0x170] sm:$0xff] }
 0x144   :  { %v554_v52 = vadd.f32 %v3324_v32, %v485_v51  ;;  %v113_v51 = vld [vmem:[#allocation3 + $0x178] sm:$0xff] }
 0x145   :  { %v1054_v54 = vpop.f32.mrf.mxu2 }
 0x146   :  { %v618_v57 = vmax.f32 %v554_v52, 0.0  ;;  %v3414_v58 = vadd.f32 %v1054_v54, %v969_v53  ;;  %v153_v54 = vpack.c.bf16 %v113_v51, %v112_v50 }
 0x147   :  { %v3441_v34 = vpop.f32.mrf.mxu1 }
 0x148   :  { %793 = vst.msk [vmem:[#allocation2 + $0x111] sm:$0xff] %vm661_vm0, %v618_v57 }
 0x149   :  { %v355_v60 = vpop.f32.mrf.mxu0 }
 0x14a   :  { %v486_v61 = vmul.f32 %v3319_v31, %v355_v60 }
 0x14c   :  { %v555_v62 = vadd.f32 %v3324_v32, %v486_v61  ;;  %2692 = vmatmul.msk.bf16.gmra.mxu0 %vm194_vm2, %v149_v59 }
 0x14d   :  { %v3443_v35 = vpop.f32.mrf.mxu2 }
 0x14e   :  { %v619_v63 = vmax.f32 %v555_v62, 0.0 }
 0x150   :  { %794 = vst.msk [vmem:[#allocation2 + $0x121] sm:$0xff] %vm661_vm0, %v619_v63  ;;  %v114_v63 = vld [vmem:[#allocation3 + $0x180] sm:$0xff] }
 0x151   :  { %v357_v0 = vpop.f32.mrf.mxu0 }
 0x152   :  { %v487_v1 = vmul.f32 %v3319_v31, %v357_v0  ;;  %v115_v0 = vld [vmem:[#allocation3 + $0x188] sm:$0xff] }
 0x154   :  { %v556_v2 = vadd.f32 %v3324_v32, %v487_v1 }
 0x156   :  { %v620_v5 = vmax.f32 %v556_v2, 0.0  ;;  %v154_v2 = vpack.c.bf16 %v115_v0, %v114_v63 }
 0x158   :  { %795 = vst.msk [vmem:[#allocation2 + $0x129] sm:$0xff] %vm661_vm0, %v620_v5 }
 0x159   :  { %v360_v7 = vpop.f32.mrf.mxu0 }
 0x15a   :  { %v488_v8 = vmul.f32 %v3319_v31, %v360_v7 }
 0x15c   :  { %v557_v9 = vadd.f32 %v3324_v32, %v488_v8  ;;  %2693 = vmatmul.msk.bf16.gmra.mxu0 %vm194_vm2, %v150_v6 }
 0x15e   :  { %v621_v10 = vmax.f32 %v557_v9, 0.0 }
 0x15f   :  { %v892_v38 = vld [vmem:[#allocation2 + $0x121] ss:$2 sm:$0xff]  ;;  %v848_v41 = vld [vmem:[#allocation2 + $0x120] ss:$2 sm:$0xff] }
 0x160   :  { %796 = vst.msk [vmem:[#allocation2 + $0x139] sm:$0xff] %vm661_vm0, %v621_v10  ;;  %v116_v10 = vld [vmem:[#allocation3 + $0x190] sm:$0xff] }
 0x161   :  { %v362_v11 = vpop.f32.mrf.mxu0 }
 0x162   :  { %v489_v12 = vmul.f32 %v3319_v31, %v362_v11  ;;  %v117_v11 = vld [vmem:[#allocation3 + $0x198] sm:$0xff] }
 0x164   :  { %v558_v13 = vadd.f32 %v3324_v32, %v489_v12 }
 0x166   :  { %v622_v16 = vmax.f32 %v558_v13, 0.0  ;;  %v155_v13 = vpack.c.bf16 %v117_v11, %v116_v10 }
 0x168   :  { %797 = vst.msk [vmem:[#allocation2 + $0x141] sm:$0xff] %vm661_vm0, %v622_v16 }
 0x169   :  { %v365_v18 = vpop.f32.mrf.mxu0 }
 0x16a   :  { %v490_v19 = vmul.f32 %v3319_v31, %v365_v18 }
 0x16c   :  { %v559_v20 = vadd.f32 %v3324_v32, %v490_v19  ;;  %2694 = vmatmul.msk.bf16.gmra.mxu0 %vm194_vm2, %v151_v17 }
 0x16e   :  { %v623_v21 = vmax.f32 %v559_v20, 0.0  ;;  %v126_v20 = vld [vmem:[#allocation3 + $0x1e0] sm:$0xff] }
 0x170   :  { %798 = vst.msk [vmem:[#allocation2 + $0x151] sm:$0xff] %vm661_vm0, %v623_v21  ;;  %v127_v21 = vld [vmem:[#allocation3 + $0x1e8] sm:$0xff] }
 0x171   :  { %v367_v22 = vpop.f32.mrf.mxu0 }
 0x172   :  { %v491_v23 = vmul.f32 %v3319_v31, %v367_v22 }
 0x174   :  { %v560_v24 = vadd.f32 %v3324_v32, %v491_v23  ;;  %v160_v23 = vpack.c.bf16 %v127_v21, %v126_v20 }
 0x176   :  { %v624_v27 = vmax.f32 %v560_v24, 0.0  ;;  %v118_v24 = vld [vmem:[#allocation3 + $0x1a0] sm:$0xff]  ;;  %2703 = vmatmul.msk.bf16.vlgmr.msra.gmra.mxu3 %vm194_vm2, %v160_v23 }
 0x177   :  { %2927 = vmatpush.bf16.msra.mxu3 %v3326_v36 }
 0x178   :  { %799 = vst.msk [vmem:[#allocation2 + $0x159] sm:$0xff] %vm661_vm0, %v624_v27  ;;  %v156_v27 = vpack.c.bf16 %v119_v25, %v118_v24 }
 0x179   :  { %v370_v29 = vpop.f32.mrf.mxu0 }
 0x17a   :  { %v492_v30 = vmul.f32 %v3319_v31, %v370_v29 }
 0x17b   :  { %2928 = vmatpush.bf16.msra.mxu3 %v3332_v40 }
 0x17c   :  { %v561_v33 = vadd.f32 %v3324_v32, %v492_v30  ;;  %2695 = vmatmul.msk.bf16.gmra.mxu0 %vm194_vm2, %v152_v28 }
 0x17e   :  { %v625_v37 = vmax.f32 %v561_v33, 0.0 }
 0x17f   :  { %v894_v39 = vld [vmem:[#allocation2 + $0x151] ss:$2 sm:$0xff]  ;;  %v850_v42 = vld [vmem:[#allocation2 + $0x150] ss:$2 sm:$0xff]  ;;  %v974_v48 = vpop.f32.mrf.mxu1 }
 0x180   :  { %800 = vst.msk [vmem:[#allocation2 + $0x169] sm:$0xff] %vm661_vm0, %v625_v37  ;;  %v914_v43 = vpack.c.bf16 %v894_v39, %v892_v38  ;;  %v870_v44 = vpack.c.bf16 %v850_v42, %v848_v41  ;;  %v896_v38 = vld [vmem:[#allocation2 + $0x1b1] ss:$2 sm:$0xff]  ;;  %v852_v39 = vld [vmem:[#allocation2 + $0x1b0] ss:$2 sm:$0xff] }
 0x181   :  { %v372_v45 = vpop.f32.mrf.mxu0 }
 0x182   :  { %v493_v46 = vmul.f32 %v3319_v31, %v372_v45  ;;  %2717 = vmatmul.msk.bf16.gmra.mxu1 %vm661_vm0, %v914_v43  ;;  %2733 = vmatmul.msk.bf16.gmra.mxu2 %vm661_vm0, %v870_v44 }
 0x184   :  { %v562_v47 = vadd.f32 %v3324_v32, %v493_v46  ;;  %v128_v46 = vld [vmem:[#allocation3 + $0x1f0] sm:$0xff] }
 0x185   :  { %v1059_v49 = vpop.f32.mrf.mxu2 }
 0x186   :  { %v626_v52 = vmax.f32 %v562_v47, 0.0  ;;  %v3450_v53 = vadd.f32 %v1059_v49, %v974_v48  ;;  %v129_v47 = vld [vmem:[#allocation3 + $0x1f8] sm:$0xff] }
 0x187   :  { %v3480_v33 = vpop.f32.mrf.mxu1  ;;  %v161_v49 = vpack.c.bf16 %v129_v47, %v128_v46 }
 0x188   :  { %801 = vst.msk [vmem:[#allocation2 + $0x171] sm:$0xff] %vm661_vm0, %v626_v52  ;;  %v120_v52 = vld [vmem:[#allocation3 + $0x1b0] sm:$0xff] }
 0x189   :  { %v375_v55 = vpop.f32.mrf.mxu0  ;;  %2704 = vmatmul.msk.bf16.gmra.mxu3 %vm194_vm2, %v161_v49 }
 0x18a   :  { %v494_v56 = vmul.f32 %v3319_v31, %v375_v55 }
 0x18c   :  { %v563_v57 = vadd.f32 %v3324_v32, %v494_v56  ;;  %2696 = vmatmul.msk.bf16.gmra.mxu0 %vm194_vm2, %v153_v54  ;;  %v121_v54 = vld [vmem:[#allocation3 + $0x1b8] sm:$0xff] }
 0x18d   :  { %v3482_v37 = vpop.f32.mrf.mxu2 }
 0x18e   :  { %v627_v59 = vmax.f32 %v563_v57, 0.0  ;;  %v157_v57 = vpack.c.bf16 %v121_v54, %v120_v52 }
 0x190   :  { %802 = vst.msk [vmem:[#allocation2 + $0x181] sm:$0xff] %vm661_vm0, %v627_v59 }
 0x191   :  { %v377_v60 = vpop.f32.mrf.mxu0 }
 0x192   :  { %v495_v61 = vmul.f32 %v3319_v31, %v377_v60 }
 0x194   :  { %v564_v62 = vadd.f32 %v3324_v32, %v495_v61 }
 0x196   :  { %v628_v1 = vmax.f32 %v564_v62, 0.0 }
 0x198   :  { %803 = vst.msk [vmem:[#allocation2 + $0x189] sm:$0xff] %vm661_vm0, %v628_v1 }
 0x199   :  { %v380_v3 = vpop.f32.mrf.mxu0 }
 0x19a   :  { %v496_v4 = vmul.f32 %v3319_v31, %v380_v3  ;;  %v123_v3 = vld [vmem:[#allocation3 + $0x1c8] sm:$0xff] }
 0x19c   :  { %v565_v5 = vadd.f32 %v3324_v32, %v496_v4  ;;  %2697 = vmatmul.msk.bf16.gmra.mxu0 %vm194_vm2, %v154_v2  ;;  %v122_v2 = vld [vmem:[#allocation3 + $0x1c0] sm:$0xff] }
 0x19e   :  { %v629_v6 = vmax.f32 %v565_v5, 0.0  ;;  %v158_v5 = vpack.c.bf16 %v123_v3, %v122_v2 }
 0x1a0   :  { %804 = vst.msk [vmem:[#allocation2 + $0x1c9] sm:$0xff] %vm661_vm0, %v629_v6 }
 0x1a1   :  { %v382_v7 = vpop.f32.mrf.mxu0 }
 0x1a2   :  { %v497_v8 = vmul.f32 %v3319_v31, %v382_v7 }
 0x1a4   :  { %v566_v9 = vadd.f32 %v3324_v32, %v497_v8 }
 0x1a6   :  { %v630_v12 = vmax.f32 %v566_v9, 0.0 }
 0x1a8   :  { %805 = vst.msk [vmem:[#allocation2 + $0x1d1] sm:$0xff] %vm661_vm0, %v630_v12 }
 0x1a9   :  { %v385_v14 = vpop.f32.mrf.mxu0 }
 0x1aa   :  { %v498_v15 = vmul.f32 %v3319_v31, %v385_v14  ;;  %v125_v14 = vld [vmem:[#allocation3 + $0x1d8] sm:$0xff] }
 0x1ac   :  { %v567_v16 = vadd.f32 %v3324_v32, %v498_v15  ;;  %2698 = vmatmul.msk.bf16.gmra.mxu0 %vm194_vm2, %v155_v13  ;;  %v124_v13 = vld [vmem:[#allocation3 + $0x1d0] sm:$0xff] }
 0x1ae   :  { %v631_v17 = vmax.f32 %v567_v16, 0.0  ;;  %v159_v16 = vpack.c.bf16 %v125_v14, %v124_v13 }
 0x1b0   :  { %806 = vst.msk [vmem:[#allocation2 + $0x1e1] sm:$0xff] %vm661_vm0, %v631_v17 }
 0x1b1   :  { %v387_v18 = vpop.f32.mrf.mxu0 }
 0x1b2   :  { %v499_v19 = vmul.f32 %v3319_v31, %v387_v18 }
 0x1b4   :  { %v568_v22 = vadd.f32 %v3324_v32, %v499_v19 }
 0x1b6   :  { %v632_v26 = vmax.f32 %v568_v22, 0.0 }
 0x1b8   :  { %807 = vst.msk [vmem:[#allocation2 + $0x1e9] sm:$0xff] %vm661_vm0, %v632_v26 }
 0x1b9   :  { %v390_v28 = vpop.f32.mrf.mxu0 }
 0x1ba   :  { %v500_v29 = vmul.f32 %v3319_v31, %v390_v28 }
 0x1bc   :  { %v569_v30 = vadd.f32 %v3324_v32, %v500_v29  ;;  %2699 = vmatmul.msk.bf16.gmra.mxu0 %vm194_vm2, %v156_v27 }
 0x1be   :  { %v633_v41 = vmax.f32 %v569_v30, 0.0 }
 0x1bf   :  { %v898_v36 = vld [vmem:[#allocation2 + $0x1e1] ss:$2 sm:$0xff]  ;;  %v854_v42 = vld [vmem:[#allocation2 + $0x1e0] ss:$2 sm:$0xff]  ;;  %v979_v50 = vpop.f32.mrf.mxu1 }
 0x1c0   :  { %808 = vst.msk [vmem:[#allocation2 + $0x1f9] sm:$0xff] %vm661_vm0, %v633_v41  ;;  %v915_v43 = vpack.c.bf16 %v898_v36, %v896_v38  ;;  %v871_v44 = vpack.c.bf16 %v854_v42, %v852_v39 }
 0x1c1   :  { %v392_v45 = vpop.f32.mrf.mxu0 }
 0x1c2   :  { %v501_v40 = vmul.f32 %v3319_v31, %v392_v45  ;;  %2718 = vmatmul.msk.bf16.gmra.mxu1 %vm661_vm0, %v915_v43  ;;  %2734 = vmatmul.msk.bf16.gmra.mxu2 %vm661_vm0, %v871_v44 }
 0x1c4   :  { %v570_v48 = vadd.f32 %v3324_v32, %v501_v40 }
 0x1c5   :  { %v1064_v51 = vpop.f32.mrf.mxu2 }
 0x1c6   :  { %v634_v55 = vmax.f32 %v570_v48, 0.0  ;;  %v3489_v56 = vadd.f32 %v1064_v51, %v979_v50 }
 0x1c7   :  { %v3516_v28 = vpop.f32.mrf.mxu1 }
 0x1c8   :  { %809 = vst.msk [vmem:[#allocation2 + $0x201] sm:$0xff] %vm661_vm0, %v634_v55 }
 0x1c9   :  { %v395_v59 = vpop.f32.mrf.mxu0 }
 0x1ca   :  { %v502_v60 = vmul.f32 %v3319_v31, %v395_v59 }
 0x1cc   :  { %v571_v61 = vadd.f32 %v3324_v32, %v502_v60  ;;  %2700 = vmatmul.msk.bf16.gmra.mxu0 %vm194_vm2, %v157_v57 }
 0x1cd   :  { %v3518_v29 = vpop.f32.mrf.mxu2 }
 0x1ce   :  { %v635_v62 = vmax.f32 %v571_v61, 0.0 }
 0x1d0   :  { %810 = vst.msk [vmem:[#allocation2 + $0x211] sm:$0xff] %vm661_vm0, %v635_v62 }
 0x1d1   :  { %v397_v63 = vpop.f32.mrf.mxu0 }
 0x1d2   :  { %v503_v0 = vmul.f32 %v3319_v31, %v397_v63 }
 0x1d4   :  { %v572_v1 = vadd.f32 %v3324_v32, %v503_v0 }
 0x1d6   :  { %v636_v4 = vmax.f32 %v572_v1, 0.0 }
 0x1d8   :  { %811 = vst.msk [vmem:[#allocation2 + $0x219] sm:$0xff] %vm661_vm0, %v636_v4 }
 0x1d9   :  { %v400_v6 = vpop.f32.mrf.mxu0 }
 0x1da   :  { %v504_v7 = vmul.f32 %v3319_v31, %v400_v6  ;;  %v2904_v6 = vld [vmem:[#allocation6 + $0x38] sm:$0xff] }
 0x1db   :  { %1326 = vmatpush.bf16.msrb.mxu1 %v2904_v6 }
 0x1dc   :  { %v573_v8 = vadd.f32 %v3324_v32, %v504_v7  ;;  %2701 = vmatmul.msk.bf16.gmra.mxu0 %vm194_vm2, %v158_v5  ;;  %v2906_v7 = vld [vmem:[#allocation6 + $0x48] sm:$0xff] }
 0x1dd   :  { %1472 = vmatpush.bf16.msrb.mxu2 %v2906_v7 }
 0x1de   :  { %v637_v9 = vmax.f32 %v573_v8, 0.0 }
 0x1df   :  { %v900_v38 = vld [vmem:[#allocation2 + $0x211] ss:$2 sm:$0xff]  ;;  %v856_v41 = vld [vmem:[#allocation2 + $0x210] ss:$2 sm:$0xff] }
 0x1e0   :  { %812 = vst.msk [vmem:[#allocation2 + $0x229] sm:$0xff] %vm661_vm0, %v637_v9 }
 0x1e1   :  { %v402_v10 = vpop.f32.mrf.mxu0 }
 0x1e2   :  { %v505_v11 = vmul.f32 %v3319_v31, %v402_v10  ;;  %v2903_v10 = vld [vmem:[#allocation6 + $0x30] sm:$0xff] }
 0x1e3   :  { %1327 = vmatpush.bf16.msrb.mxu1 %v2903_v10 }
 0x1e4   :  { %v574_v12 = vadd.f32 %v3324_v32, %v505_v11  ;;  %v2905_v11 = vld [vmem:[#allocation6 + $0x40] sm:$0xff] }
 0x1e5   :  { %1473 = vmatpush.bf16.msrb.mxu2 %v2905_v11 }
 0x1e6   :  { %v638_v15 = vmax.f32 %v574_v12, 0.0 }
 0x1e8   :  { %813 = vst.msk [vmem:[#allocation2 + $0x231] sm:$0xff] %vm661_vm0, %v638_v15 }
 0x1e9   :  { %v405_v17 = vpop.f32.mrf.mxu0 }
 0x1ea   :  { %v506_v18 = vmul.f32 %v3319_v31, %v405_v17 }
 0x1ec   :  { %v575_v19 = vadd.f32 %v3324_v32, %v506_v18  ;;  %2702 = vmatmul.msk.bf16.gmra.mxu0 %vm194_vm2, %v159_v16 }
 0x1ee   :  { %v639_v20 = vmax.f32 %v575_v19, 0.0 }
 0x1f0   :  { %814 = vst.msk [vmem:[#allocation2 + $0x241] sm:$0xff] %vm661_vm0, %v639_v20 }
 0x1f1   :  { %v407_v21 = vpop.f32.mrf.mxu0 }
 0x1f2   :  { %v507_v22 = vmul.f32 %v3319_v31, %v407_v21 }
 0x1f4   :  { %v576_v23 = vadd.f32 %v3324_v32, %v507_v22 }
 0x1f6   :  { %v640_v24 = vmax.f32 %v576_v23, 0.0 }
 0x1f8   :  { %815 = vst.msk [vmem:[#allocation2 + $0x249] sm:$0xff] %vm661_vm0, %v640_v24 }
 0x1f9   :  { %v410_v25 = vpop.f32.mrf.mxu0  ;;  %v450_v18 = vpop.f32.mrf.mxu3 }
 0x1fa   :  { %v508_v26 = vmul.f32 %v3319_v31, %v410_v25 }
 0x1fc   :  { %v577_v27 = vadd.f32 %v3324_v32, %v508_v26 }
 0x1fe   :  { %v641_v30 = vmax.f32 %v577_v27, 0.0 }
 0x1ff   :  { %v902_v39 = vld [vmem:[#allocation2 + $0x241] ss:$2 sm:$0xff]  ;;  %v858_v36 = vld [vmem:[#allocation2 + $0x240] ss:$2 sm:$0xff]  ;;  %v984_v46 = vpop.f32.mrf.mxu1 }
 0x200   :  { %816 = vst.msk [vmem:[#allocation2 + $0x259] sm:$0xff] %vm661_vm0, %v641_v30  ;;  %v916_v42 = vpack.c.bf16 %v902_v39, %v900_v38  ;;  %v872_v43 = vpack.c.bf16 %v858_v36, %v856_v41  ;;  %v524_v39 = vmul.f32 %v3319_v31, %v450_v18  ;;  %v1392_v18 = vld [vmem:[#allocation2 + $0xa9] ss:$2 sm:$0xff] }
 0x201   :  { %v412_v44 = vpop.f32.mrf.mxu0  ;;  %v452_v36 = vpop.f32.mrf.mxu3 }
 0x202   :  { %v509_v45 = vmul.f32 %v3319_v31, %v412_v44  ;;  %2719 = vmatmul.msk.bf16.gmra.mxu1 %vm661_vm0, %v916_v42  ;;  %2735 = vmatmul.msk.bf16.gmra.mxu2 %vm661_vm0, %v872_v43  ;;  %v593_v43 = vadd.f32 %v3324_v32, %v524_v39  ;;  %v525_v44 = vmul.f32 %v3319_v31, %v452_v36 }
 0x204   :  { %v578_v40 = vadd.f32 %v3324_v32, %v509_v45 }
 0x205   :  { %v1069_v47 = vpop.f32.mrf.mxu2 }
 0x206   :  { %v642_v48 = vmax.f32 %v578_v40, 0.0  ;;  %v3525_v49 = vadd.f32 %v1069_v47, %v984_v46  ;;  %v657_v40 = vmax.f32 %v593_v43, 0.0  ;;  %v594_v46 = vadd.f32 %v3324_v32, %v525_v44  ;;  %v1396_v43 = vld [vmem:[#allocation2 + $0x109] ss:$2 sm:$0xff] }
 0x207   :  { %v3548_v21 = vpop.f32.mrf.mxu1 }
 0x208   :  { %817 = vst.msk [vmem:[#allocation2 + $0x261] sm:$0xff] %vm661_vm0, %v642_v48 }
 0x209   :  { %v415_v50 = vpop.f32.mrf.mxu0  ;;  %832 = vst.msk [vmem:[#allocation2 + $0x319] sm:$0xff] %vm661_vm0, %v657_v40  ;;  %v1394_v40 = vld [vmem:[#allocation2 + $0xd9] ss:$2 sm:$0xff] }
 0x20a   :  { %v510_v51 = vmul.f32 %v3319_v31, %v415_v50 }
 0x20c   :  { %v579_v52 = vadd.f32 %v3324_v32, %v510_v51 }
 0x20d   :  { %v3550_v22 = vpop.f32.mrf.mxu2 }
 0x20e   :  { %v643_v54 = vmax.f32 %v579_v52, 0.0  ;;  %v658_v52 = vmax.f32 %v594_v46, 0.0 }
 0x210   :  { %818 = vst.msk [vmem:[#allocation2 + $0x271] sm:$0xff] %vm661_vm0, %v643_v54 }
 0x211   :  { %v417_v55 = vpop.f32.mrf.mxu0  ;;  %833 = vst.msk [vmem:[#allocation2 + $0x321] sm:$0xff] %vm661_vm0, %v658_v52 }
 0x212   :  { %v511_v57 = vmul.f32 %v3319_v31, %v417_v55  ;;  %v455_v55 = vpop.f32.mrf.mxu3 }
 0x214   :  { %v580_v59 = vadd.f32 %v3324_v32, %v511_v57 }
 0x216   :  { %v644_v60 = vmax.f32 %v580_v59, 0.0 }
 0x218   :  { %819 = vst.msk [vmem:[#allocation2 + $0x279] sm:$0xff] %vm661_vm0, %v644_v60  ;;  %v1242_v60 = vld [vmem:[#allocation2 + $0x48] ss:$2 sm:$0xff] }
 0x219   :  { %v420_v61 = vpop.f32.mrf.mxu0 }
 0x21a   :  { %v512_v62 = vmul.f32 %v3319_v31, %v420_v61  ;;  %v1388_v61 = vld [vmem:[#allocation2 + $0x49] ss:$2 sm:$0xff] }
 0x21c   :  { %v581_v63 = vadd.f32 %v3324_v32, %v512_v62 }
 0x21e   :  { %v645_v0 = vmax.f32 %v581_v63, 0.0  ;;  %v1240_v63 = vld [vmem:[#allocation2 + $0x18] ss:$2 sm:$0xff] }
 0x21f   :  { %v904_v24 = vld [vmem:[#allocation2 + $0x271] ss:$2 sm:$0xff]  ;;  %v860_v26 = vld [vmem:[#allocation2 + $0x270] ss:$2 sm:$0xff] }
 0x220   :  { %820 = vst.msk [vmem:[#allocation2 + $0x289] sm:$0xff] %vm661_vm0, %v645_v0  ;;  %v1386_v0 = vld [vmem:[#allocation2 + $0x19] ss:$2 sm:$0xff] }
 0x221   :  { %v422_v1 = vpop.f32.mrf.mxu0 }
 0x222   :  { %v513_v2 = vmul.f32 %v3319_v31, %v422_v1  ;;  %v1271_v1 = vpack.c.bf16 %v1242_v60, %v1240_v63  ;;  %v1252_v60 = vld [vmem:[#allocation2 + $0x138] ss:$2 sm:$0xff] }
 0x224   :  { %v582_v3 = vadd.f32 %v3324_v32, %v513_v2  ;;  %v1417_v2 = vpack.c.bf16 %v1388_v61, %v1386_v0  ;;  %v1400_v61 = vld [vmem:[#allocation2 + $0x169] ss:$2 sm:$0xff] }
 0x225   :  { %v2902_v0 = vld [vmem:[#allocation6 + $0x28] sm:$0xff] }
 0x226   :  { %v646_v4 = vmax.f32 %v582_v3, 0.0  ;;  %v526_v3 = vmul.f32 %v3319_v31, %v455_v55 }
 0x228   :  { %821 = vst.msk [vmem:[#allocation2 + $0x291] sm:$0xff] %vm661_vm0, %v646_v4  ;;  %v595_v7 = vadd.f32 %v3324_v32, %v526_v3  ;;  %v1398_v3 = vld [vmem:[#allocation2 + $0x139] ss:$2 sm:$0xff] }
 0x229   :  { %v425_v5 = vpop.f32.mrf.mxu0 }
 0x22a   :  { %v514_v8 = vmul.f32 %v3319_v31, %v425_v5  ;;  %v457_v5 = vpop.f32.mrf.mxu3  ;;  %v659_v10 = vmax.f32 %v595_v7, 0.0 }
 0x22c   :  { %v583_v9 = vadd.f32 %v3324_v32, %v514_v8  ;;  %v527_v8 = vmul.f32 %v3319_v31, %v457_v5  ;;  %834 = vst.msk [vmem:[#allocation2 + $0x331] sm:$0xff] %vm661_vm0, %v659_v10  ;;  %v2901_v5 = vld [vmem:[#allocation6 + $0x20] sm:$0xff] }
 0x22d   :  { %v1258_v10 = vld [vmem:[#allocation2 + $0x1f8] ss:$2 sm:$0xff] }
 0x22e   :  { %v647_v12 = vmax.f32 %v583_v9, 0.0  ;;  %v596_v11 = vadd.f32 %v3324_v32, %v527_v8 }
 0x230   :  { %822 = vst.msk [vmem:[#allocation2 + $0x2a1] sm:$0xff] %vm661_vm0, %v647_v12 }
 0x231   :  { %v427_v13 = vpop.f32.mrf.mxu0 }
 0x232   :  { %v515_v14 = vmul.f32 %v3319_v31, %v427_v13  ;;  %v660_v13 = vmax.f32 %v596_v11, 0.0  ;;  %v1404_v11 = vld [vmem:[#allocation2 + $0x1f9] ss:$2 sm:$0xff] }
 0x234   :  { %v584_v15 = vadd.f32 %v3324_v32, %v515_v14  ;;  %835 = vst.msk [vmem:[#allocation2 + $0x339] sm:$0xff] %vm661_vm0, %v660_v13  ;;  %v1256_v13 = vld [vmem:[#allocation2 + $0x1c8] ss:$2 sm:$0xff] }
 0x236   :  { %v648_v16 = vmax.f32 %v584_v15, 0.0 }
 0x238   :  { %823 = vst.msk [vmem:[#allocation2 + $0x2a9] sm:$0xff] %vm661_vm0, %v648_v16 }
 0x239   :  { %v430_v17 = vpop.f32.mrf.mxu0 }
 0x23a   :  { %v516_v19 = vmul.f32 %v3319_v31, %v430_v17  ;;  %v1246_v17 = vld [vmem:[#allocation2 + $0xa8] ss:$2 sm:$0xff] }
 0x23c   :  { %v585_v20 = vadd.f32 %v3324_v32, %v516_v19 }
 0x23e   :  { %v649_v23 = vmax.f32 %v585_v20, 0.0  ;;  %v1244_v20 = vld [vmem:[#allocation2 + $0x78] ss:$2 sm:$0xff] }
 0x23f   :  { %v906_v25 = vld [vmem:[#allocation2 + $0x2a1] ss:$2 sm:$0xff]  ;;  %v862_v27 = vld [vmem:[#allocation2 + $0x2a0] ss:$2 sm:$0xff]  ;;  %v989_v47 = vpop.f32.mrf.mxu1 }
 0x240   :  { %824 = vst.msk [vmem:[#allocation2 + $0x2b9] sm:$0xff] %vm661_vm0, %v649_v23  ;;  %v917_v30 = vpack.c.bf16 %v906_v25, %v904_v24  ;;  %v873_v38 = vpack.c.bf16 %v862_v27, %v860_v26  ;;  %v1390_v23 = vld [vmem:[#allocation2 + $0x79] ss:$2 sm:$0xff]  ;;  %v1272_v24 = vpack.c.bf16 %v1246_v17, %v1244_v20  ;;  %v2945_v27 = vld [vmem:[%s4015_s2] ss:$0 sm:$0xff] }
 0x241   :  { %v432_v41 = vpop.f32.mrf.mxu0  ;;  %v1418_v25 = vpack.c.bf16 %v1392_v18, %v1390_v23  ;;  %v1402_v17 = vld [vmem:[#allocation2 + $0x1c9] ss:$2 sm:$0xff]  ;;  %v1097_v20 = vld [vmem:[#allocation2 + $0x32] ss:$2 sm:$0xff] }
 0x242   :  { %v517_v42 = vmul.f32 %v3319_v31, %v432_v41  ;;  %2720 = vmatmul.msk.bf16.gmra.mxu1 %vm661_vm0, %v917_v30  ;;  %2736 = vmatmul.msk.bf16.gmra.mxu2 %vm661_vm0, %v873_v38  ;;  %v1421_v18 = vpack.c.bf16 %v1404_v11, %v1402_v17  ;;  %v1262_v23 = vld [vmem:[#allocation2 + $0x258] ss:$2 sm:$0xff] }
 0x243   :  { %v1680_v11 = vld [vmem:[#allocation2 + $0x60] ss:$2 sm:$0xff] }
 0x244   :  { %v586_v45 = vadd.f32 %v3324_v32, %v517_v42  ;;  %v1250_v42 = vld [vmem:[#allocation2 + $0x108] ss:$2 sm:$0xff] }
 0x245   :  { %v1074_v48 = vpop.f32.mrf.mxu2 }
 0x246   :  { %v650_v50 = vmax.f32 %v586_v45, 0.0  ;;  %v3561_v51 = vadd.f32 %v1074_v48, %v989_v47  ;;  %v1248_v45 = vld [vmem:[#allocation2 + $0xd8] ss:$2 sm:$0xff]  ;;  %v1419_v47 = vpack.c.bf16 %v1396_v43, %v1394_v40  ;;  %v2911_v43 = vld [vmem:[#allocation6 + $0x70] sm:$0xff] }
 0x247   :  { %v1273_v46 = vpack.c.bf16 %v1250_v42, %v1248_v45  ;;  %v3596_v55 = vpop.f32.mrf.mxu1  ;;  %v2909_v42 = vld [vmem:[#allocation6 + $0x60] sm:$0xff]  ;;  %v1264_v45 = vld [vmem:[#allocation2 + $0x288] ss:$2 sm:$0xff] }
 0x248   :  { %825 = vst.msk [vmem:[#allocation2 + $0x2c1] sm:$0xff] %vm661_vm0, %v650_v50 }
 0x249   :  { %v435_v54 = vpop.f32.mrf.mxu0 }
 0x24a   :  { %v518_v57 = vmul.f32 %v3319_v31, %v435_v54 }
 0x24c   :  { %v587_v59 = vadd.f32 %v3324_v32, %v518_v57 }
 0x24d   :  { %v3598_v57 = vpop.f32.mrf.mxu2 }
 0x24e   :  { %v651_v62 = vmax.f32 %v587_v59, 0.0  ;;  %v1254_v59 = vld [vmem:[#allocation2 + $0x168] ss:$2 sm:$0xff] }
 0x250   :  { %826 = vst.msk [vmem:[#allocation2 + $0x2d1] sm:$0xff] %vm661_vm0, %v651_v62 }
 0x251   :  { %v437_v4 = vpop.f32.mrf.mxu0 }
 0x252   :  { %v519_v6 = vmul.f32 %v3319_v31, %v437_v4  ;;  %2762 = vmatmul.msk.bf16.vlgmr.msrb.gmra.mxu1 %vm661_vm0, %v1271_v1  ;;  %2778 = vmatmul.msk.bf16.vlgmr.msrb.gmra.mxu2 %vm661_vm0, %v1417_v2  ;;  %v1274_v2 = vpack.c.bf16 %v1254_v59, %v1252_v60  ;;  %v1420_v4 = vpack.c.bf16 %v1400_v61, %v1398_v3  ;;  %v1270_v60 = vld [vmem:[#allocation2 + $0x318] ss:$2 sm:$0xff]  ;;  %v2907_v3 = vld [vmem:[#allocation6 + $0x50] sm:$0xff] }
 0x254   :  { %v588_v9 = vadd.f32 %v3324_v32, %v519_v6 }
 0x256   :  { %v652_v12 = vmax.f32 %v588_v9, 0.0 }
 0x258   :  { %827 = vst.msk [vmem:[#allocation2 + $0x2d9] sm:$0xff] %vm661_vm0, %v652_v12 }
 0x259   :  { %v440_v14 = vpop.f32.mrf.mxu0 }
 0x25a   :  { %v520_v15 = vmul.f32 %v3319_v31, %v440_v14  ;;  %v2946_v31 = vld [vmem:[%s4015_s2 + $0x1] ss:$0 sm:$0xff]  ;;  %v2908_v14 = vld [vmem:[#allocation6 + $0x58] sm:$0xff]  ;;  %s2549_s2 = sshll.u32 %s4022_s9, 4  ;;  %s2550_s2 = int_to_ptr.hbm [resolvable:$true] %s2549_s2 }
 0x25c   :  { %v589_v16 = vadd.f32 %v3324_v32, %v520_v15 }
 0x25e   :  { %v653_v19 = vmax.f32 %v589_v16, 0.0  ;;  %v1275_v16 = vpack.c.bf16 %v1258_v10, %v1256_v13  ;;  %v1109_v10 = vld [vmem:[#allocation2 + $0x152] ss:$2 sm:$0xff]  ;;  %v1826_v13 = vld [vmem:[#allocation2 + $0x61] ss:$2 sm:$0xff] }
 0x25f   :  { %v908_v62 = vld [vmem:[#allocation2 + $0x2d1] ss:$2 sm:$0xff]  ;;  %v864_v12 = vld [vmem:[#allocation2 + $0x2d0] ss:$2 sm:$0xff] }
 0x260   :  { %828 = vst.msk [vmem:[#allocation2 + $0x2e9] sm:$0xff] %vm661_vm0, %v653_v19  ;;  %v1095_v19 = vld [vmem:[#allocation2 + $0x2] ss:$2 sm:$0xff] }
 0x261   :  { %v442_v26 = vpop.f32.mrf.mxu0 }
 0x262   :  { %v521_v30 = vmul.f32 %v2945_v27, %v442_v26  ;;  %2763 = vmatmul.msk.bf16.gmra.mxu1 %vm661_vm0, %v1272_v24  ;;  %2779 = vmatmul.msk.bf16.gmra.mxu2 %vm661_vm0, %v1418_v25  ;;  %v1408_v24 = vld [vmem:[#allocation2 + $0x259] ss:$2 sm:$0xff]  ;;  %v1260_v25 = vld [vmem:[#allocation2 + $0x228] ss:$2 sm:$0xff]  ;;  %v1126_v26 = vpack.c.bf16 %v1097_v20, %v1095_v19 }
 0x263   :  { %v1111_v20 = vld [vmem:[#allocation2 + $0x1b2] ss:$2 sm:$0xff] }
 0x264   :  { %v590_v32 = vadd.f32 %v2946_v31, %v521_v30  ;;  %v1406_v30 = vld [vmem:[#allocation2 + $0x229] ss:$2 sm:$0xff] }
 0x266   :  { %v654_v38 = vmax.f32 %v590_v32, 0.0  ;;  %v2910_v32 = vld [vmem:[#allocation6 + $0x68] sm:$0xff] }
 0x267   :  { %1764 = vmatpush.bf16.msra.mxu1 %v2910_v32 }
 0x268   :  { %829 = vst.msk [vmem:[#allocation2 + $0x2f1] sm:$0xff] %vm661_vm0, %v654_v38  ;;  %v2912_v38 = vld [vmem:[#allocation6 + $0x78] sm:$0xff] }
 0x269   :  { %v445_v39 = vpop.f32.mrf.mxu0  ;;  %1910 = vmatpush.bf16.msra.mxu2 %v2912_v38  ;;  %v1117_v38 = vld [vmem:[#allocation2 + $0x242] ss:$2 sm:$0xff] }
 0x26a   :  { %v522_v41 = vmul.f32 %v2945_v27, %v445_v39  ;;  %v1101_v39 = vld [vmem:[#allocation2 + $0x92] ss:$2 sm:$0xff] }
 0x26b   :  { %1765 = vmatpush.bf16.msra.mxu1 %v2909_v42  ;;  %v1686_v42 = vld [vmem:[#allocation2 + $0xf0] ss:$2 sm:$0xff] }
 0x26c   :  { %v591_v36 = vadd.f32 %v2946_v31, %v522_v41  ;;  %v1266_v41 = vld [vmem:[#allocation2 + $0x2b8] ss:$2 sm:$0xff] }
 0x26d   :  { %1911 = vmatpush.bf16.msra.mxu2 %v2911_v43 }
 0x26e   :  { %v655_v44 = vmax.f32 %v591_v36, 0.0  ;;  %v1412_v36 = vld [vmem:[#allocation2 + $0x2b9] ss:$2 sm:$0xff] }
 0x26f   :  { %v1268_v59 = vld [vmem:[#allocation2 + $0x2e8] ss:$2 sm:$0xff]  ;;  %v1414_v61 = vld [vmem:[#allocation2 + $0x2e9] ss:$2 sm:$0xff] }
 0x270   :  { %830 = vst.msk [vmem:[#allocation2 + $0x301] sm:$0xff] %vm661_vm0, %v655_v44  ;;  %v1099_v44 = vld [vmem:[#allocation2 + $0x62] ss:$2 sm:$0xff] }
 0x271   :  { %v447_v48 = vpop.f32.mrf.mxu0  ;;  %v1127_v40 = vpack.c.bf16 %v1101_v39, %v1099_v44  ;;  %v1688_v39 = vld [vmem:[#allocation2 + $0x120] ss:$2 sm:$0xff] }
 0x272   :  { %v523_v50 = vmul.f32 %v2945_v27, %v447_v48  ;;  %2764 = vmatmul.msk.bf16.gmra.mxu1 %vm661_vm0, %v1273_v46  ;;  %2780 = vmatmul.msk.bf16.gmra.mxu2 %vm661_vm0, %v1419_v47  ;;  %v1276_v27 = vpack.c.bf16 %v1262_v23, %v1260_v25  ;;  %v1277_v46 = vpack.c.bf16 %v1266_v41, %v1264_v45  ;;  %v1410_v47 = vld [vmem:[#allocation2 + $0x289] ss:$2 sm:$0xff]  ;;  %v1113_v23 = vld [vmem:[#allocation2 + $0x1e2] ss:$2 sm:$0xff] }
 0x273   :  { %v1423_v48 = vpack.c.bf16 %v1412_v36, %v1410_v47  ;;  %v1830_v25 = vld [vmem:[#allocation2 + $0xc1] ss:$2 sm:$0xff]  ;;  %v1115_v36 = vld [vmem:[#allocation2 + $0x212] ss:$2 sm:$0xff]  ;;  %v1711_v44 = vpack.c.bf16 %v1688_v39, %v1686_v42  ;;  %v1832_v45 = vld [vmem:[#allocation2 + $0xf1] ss:$2 sm:$0xff] }
 0x274   :  { %v592_v52 = vadd.f32 %v2946_v31, %v523_v50  ;;  %v1422_v31 = vpack.c.bf16 %v1408_v24, %v1406_v30  ;;  %v1684_v24 = vld [vmem:[#allocation2 + $0xc0] ss:$2 sm:$0xff]  ;;  %v1834_v41 = vld [vmem:[#allocation2 + $0x121] ss:$2 sm:$0xff]  ;;  %v1131_v43 = vpack.c.bf16 %v1117_v38, %v1115_v36  ;;  %v1846_v38 = vld [vmem:[#allocation2 + $0x271] ss:$2 sm:$0xff] }
 0x275   :  { %v1532_v39 = vld [vmem:[#allocation2 + $0x1a] ss:$2 sm:$0xff] }
 0x276   :  { %v656_v54 = vmax.f32 %v592_v52, 0.0 }
 0x278   :  { %831 = vst.msk [vmem:[#allocation2 + $0x309] sm:$0xff] %vm661_vm0, %v656_v54  ;;  %v1105_v54 = vld [vmem:[#allocation2 + $0xf2] ss:$2 sm:$0xff] }
 0x27f   :  { %v910_v63 = vld [vmem:[#allocation2 + $0x301] ss:$2 sm:$0xff]  ;;  %v994_v6 = vpop.f32.mrf.mxu1  ;;  %v866_v9 = vld [vmem:[#allocation2 + $0x300] ss:$2 sm:$0xff] }
 0x280   :  { %v918_v1 = vpack.c.bf16 %v910_v63, %v908_v62  ;;  %v874_v15 = vpack.c.bf16 %v866_v9, %v864_v12  ;;  %v1416_v62 = vld [vmem:[#allocation2 + $0x319] ss:$2 sm:$0xff]  ;;  %v1103_v63 = vld [vmem:[#allocation2 + $0xc2] ss:$2 sm:$0xff] }
 0x282   :  { %2721 = vmatmul.msk.bf16.vlgmr.msrb.gmra.mxu3 %vm661_vm0, %v918_v1  ;;  %2765 = vmatmul.msk.bf16.gmra.mxu1 %vm661_vm0, %v1274_v2  ;;  %v1278_v1 = vpack.c.bf16 %v1270_v60, %v1268_v59  ;;  %v1424_v2 = vpack.c.bf16 %v1416_v62, %v1414_v61  ;;  %v1838_v59 = vld [vmem:[#allocation2 + $0x181] ss:$2 sm:$0xff]  ;;  %v1119_v60 = vld [vmem:[#allocation2 + $0x272] ss:$2 sm:$0xff] }
 0x283   :  { %2781 = vmatmul.msk.bf16.gmra.mxu2 %vm661_vm0, %v1420_v4  ;;  %1181 = vmatpush.bf16.msrb.mxu3 %v2902_v0  ;;  %v1128_v0 = vpack.c.bf16 %v1105_v54, %v1103_v63  ;;  %v1692_v54 = vld [vmem:[#allocation2 + $0x180] ss:$2 sm:$0xff]  ;;  %v1690_v61 = vld [vmem:[#allocation2 + $0x150] ss:$2 sm:$0xff] }
 0x284   :  { %v1712_v63 = vpack.c.bf16 %v1692_v54, %v1690_v61  ;;  %v1704_v61 = vld [vmem:[#allocation2 + $0x2d0] ss:$2 sm:$0xff] }
 0x285   :  { %v1079_v7 = vpop.f32.mrf.mxu2 }
 0x286   :  { %v3603_v8 = vadd.f32 %v1079_v7, %v994_v6 }
 0x287   :  { %1182 = vmatpush.bf16.msrb.mxu3 %v2901_v5  ;;  %v3614_v50 = vpop.f32.mrf.mxu1 }
 0x28d   :  { %v3616_v52 = vpop.f32.mrf.mxu2 }
 0x292   :  { %2737 = vmatmul.msk.bf16.vlgmr.msra.gmra.mxu3 %vm661_vm0, %v874_v15  ;;  %2766 = vmatmul.msk.bf16.gmra.mxu1 %vm661_vm0, %v1275_v16  ;;  %v1678_v15 = vld [vmem:[#allocation2 + $0x30] ss:$2 sm:$0xff] }
 0x293   :  { %2782 = vmatmul.msk.bf16.gmra.mxu2 %vm661_vm0, %v1421_v18  ;;  %1618 = vmatpush.bf16.msra.mxu3 %v2908_v14  ;;  %v1107_v14 = vld [vmem:[#allocation2 + $0x122] ss:$2 sm:$0xff]  ;;  %v1709_v17 = vpack.c.bf16 %v1680_v11, %v1678_v15  ;;  %v1824_v18 = vld [vmem:[#allocation2 + $0x31] ss:$2 sm:$0xff] }
 0x294   :  { %v1129_v16 = vpack.c.bf16 %v1109_v10, %v1107_v14  ;;  %v1855_v19 = vpack.c.bf16 %v1826_v13, %v1824_v18  ;;  %v1696_v10 = vld [vmem:[#allocation2 + $0x210] ss:$2 sm:$0xff]  ;;  %v1842_v11 = vld [vmem:[#allocation2 + $0x211] ss:$2 sm:$0xff]  ;;  %v1694_v14 = vld [vmem:[#allocation2 + $0x1e0] ss:$2 sm:$0xff] }
 0x295   :  { %v1123_v13 = vld [vmem:[#allocation2 + $0x2d2] ss:$2 sm:$0xff]  ;;  %v1840_v18 = vld [vmem:[#allocation2 + $0x1e1] ss:$2 sm:$0xff] }
 0x297   :  { %1619 = vmatpush.bf16.msra.mxu3 %v2907_v3 }
 0x2a2   :  { %2746 = vmatmul.msk.bf16.vlgmr.msrb.gmra.mxu3 %vm661_vm0, %v1126_v26  ;;  %2767 = vmatmul.msk.bf16.gmra.mxu1 %vm661_vm0, %v1276_v27  ;;  %v1682_v26 = vld [vmem:[#allocation2 + $0x90] ss:$2 sm:$0xff]  ;;  %v1130_v27 = vpack.c.bf16 %v1113_v23, %v1111_v20  ;;  %v1859_v20 = vpack.c.bf16 %v1842_v11, %v1840_v18  ;;  %v1706_v18 = vld [vmem:[#allocation2 + $0x300] ss:$2 sm:$0xff] }
 0x2a3   :  { %2783 = vmatmul.msk.bf16.gmra.mxu2 %vm661_vm0, %v1422_v31  ;;  %v1710_v30 = vpack.c.bf16 %v1684_v24, %v1682_v26  ;;  %v1828_v31 = vld [vmem:[#allocation2 + $0x91] ss:$2 sm:$0xff] }
 0x2a4   :  { %v1856_v32 = vpack.c.bf16 %v1830_v25, %v1828_v31  ;;  %v1700_v31 = vld [vmem:[#allocation2 + $0x270] ss:$2 sm:$0xff] }
 0x2b2   :  { %2747 = vmatmul.msk.bf16.gmra.mxu3 %vm661_vm0, %v1127_v40  ;;  %2768 = vmatmul.msk.bf16.gmra.mxu1 %vm661_vm0, %v1277_v46  ;;  %v1857_v40 = vpack.c.bf16 %v1834_v41, %v1832_v45  ;;  %v1698_v41 = vld [vmem:[#allocation2 + $0x240] ss:$2 sm:$0xff] }
 0x2b3   :  { %2784 = vmatmul.msk.bf16.gmra.mxu2 %vm661_vm0, %v1423_v48  ;;  %v1121_v48 = vld [vmem:[#allocation2 + $0x2a2] ss:$2 sm:$0xff]  ;;  %v1714_v42 = vpack.c.bf16 %v1700_v31, %v1698_v41 }
 0x2b4   :  { %v1132_v62 = vpack.c.bf16 %v1121_v48, %v1119_v60  ;;  %v1538_v60 = vld [vmem:[#allocation2 + $0xaa] ss:$2 sm:$0xff] }
 0x2bf   :  { %v999_v4 = vpop.f32.mrf.mxu1 }
 0x2c2   :  { %2748 = vmatmul.msk.bf16.gmra.mxu3 %vm661_vm0, %v1128_v0  ;;  %2769 = vmatmul.msk.bf16.gmra.mxu1 %vm661_vm0, %v1278_v1  ;;  %v1836_v0 = vld [vmem:[#allocation2 + $0x151] ss:$2 sm:$0xff] }
 0x2c3   :  { %2785 = vmatmul.msk.bf16.gmra.mxu2 %vm661_vm0, %v1424_v2  ;;  %v1858_v1 = vpack.c.bf16 %v1838_v59, %v1836_v0  ;;  %v2914_v2 = vld [vmem:[#allocation6 + $0x88] sm:$0xff] }
 0x2c4   :  { %2056 = vmatpush.bf16.msrb.mxu3 %v2914_v2  ;;  %v1702_v2 = vld [vmem:[#allocation2 + $0x2a0] ss:$2 sm:$0xff] }
 0x2c5   :  { %v1084_v5 = vpop.f32.mrf.mxu2 }
 0x2c6   :  { %v3621_v6 = vadd.f32 %v1084_v5, %v999_v4 }
 0x2c7   :  { %v1001_v7 = vpop.f32.mrf.mxu1 }
 0x2cd   :  { %v1086_v9 = vpop.f32.mrf.mxu2 }
 0x2ce   :  { %v3623_v12 = vadd.f32 %v1086_v9, %v1001_v7  ;;  %v1125_v9 = vld [vmem:[#allocation2 + $0x302] ss:$2 sm:$0xff] }
 0x2cf   :  { %v3634_v46 = vpop.f32.mrf.mxu1 }
 0x2d2   :  { %2749 = vmatmul.msk.bf16.gmra.mxu3 %vm661_vm0, %v1129_v16  ;;  %2810 = vmatmul.msk.bf16.vlgmr.msra.gmra.mxu1 %vm661_vm0, %v1709_v17  ;;  %v1133_v16 = vpack.c.bf16 %v1125_v9, %v1123_v13  ;;  %v1713_v17 = vpack.c.bf16 %v1696_v10, %v1694_v14  ;;  %v1848_v9 = vld [vmem:[#allocation2 + $0x2a1] ss:$2 sm:$0xff] }
 0x2d3   :  { %2826 = vmatmul.msk.bf16.vlgmr.msra.gmra.mxu2 %vm661_vm0, %v1855_v19 }
 0x2d5   :  { %v3636_v47 = vpop.f32.mrf.mxu2 }
 0x2d7   :  { %v3641_v4 = vpop.f32.mrf.mxu1 }
 0x2dd   :  { %v3643_v5 = vpop.f32.mrf.mxu2 }
 0x2df   :  { %v3645_v15 = vpop.f32.mrf.mxu1 }
 0x2e2   :  { %2750 = vmatmul.msk.bf16.gmra.mxu3 %vm661_vm0, %v1130_v27  ;;  %2811 = vmatmul.msk.bf16.gmra.mxu1 %vm661_vm0, %v1710_v30  ;;  %v1534_v30 = vld [vmem:[#allocation2 + $0x4a] ss:$2 sm:$0xff] }
 0x2e3   :  { %2827 = vmatmul.msk.bf16.gmra.mxu2 %vm661_vm0, %v1856_v32  ;;  %v1563_v36 = vpack.c.bf16 %v1534_v30, %v1532_v39  ;;  %v1540_v30 = vld [vmem:[#allocation2 + $0xda] ss:$2 sm:$0xff] }
 0x2e5   :  { %v3647_v19 = vpop.f32.mrf.mxu2 }
 0x2e7   :  { %v3654_v25 = vpop.f32.mrf.mxu1 }
 0x2ed   :  { %v3656_v26 = vpop.f32.mrf.mxu2 }
 0x2ef   :  { %v3663_v45 = vpop.f32.mrf.mxu1 }
 0x2f2   :  { %2751 = vmatmul.msk.bf16.gmra.mxu3 %vm661_vm0, %v1131_v43  ;;  %2812 = vmatmul.msk.bf16.gmra.mxu1 %vm661_vm0, %v1711_v44  ;;  %v1844_v43 = vld [vmem:[#allocation2 + $0x241] ss:$2 sm:$0xff] }
 0x2f3   :  { %2828 = vmatmul.msk.bf16.gmra.mxu2 %vm661_vm0, %v1857_v40  ;;  %v1860_v44 = vpack.c.bf16 %v1846_v38, %v1844_v43 }
 0x2f5   :  { %v3665_v40 = vpop.f32.mrf.mxu2 }
 0x2fd   :  { %v3674_v0 = vpop.f32.mrf.mxu2 }
 0x302   :  { %2752 = vmatmul.msk.bf16.gmra.mxu3 %vm661_vm0, %v1132_v62  ;;  %2813 = vmatmul.msk.bf16.gmra.mxu1 %vm661_vm0, %v1712_v63  ;;  %v3672_v62 = vpop.f32.mrf.mxu1  ;;  %v1850_v63 = vld [vmem:[#allocation2 + $0x2d1] ss:$2 sm:$0xff] }
 0x303   :  { %2829 = vmatmul.msk.bf16.gmra.mxu2 %vm661_vm0, %v1858_v1  ;;  %v1536_v1 = vld [vmem:[#allocation2 + $0x7a] ss:$2 sm:$0xff]  ;;  %v1861_v10 = vpack.c.bf16 %v1850_v63, %v1848_v9 }
 0x305   :  { %v1004_v3 = vpop.f32.mrf.mxu3 }
 0x306   :  { %v3684_v14 = vpop.f32.mrf.mxu2 }
 0x30a   :  { %v3682_v13 = vpop.f32.mrf.mxu1 }
 0x30d   :  { %v1006_v7 = vpop.f32.mrf.mxu3 }
 0x312   :  { %2753 = vmatmul.msk.bf16.gmra.mxu3 %vm661_vm0, %v1133_v16  ;;  %2814 = vmatmul.msk.bf16.gmra.mxu1 %vm661_vm0, %v1713_v17  ;;  %v1542_v17 = vld [vmem:[#allocation2 + $0x10a] ss:$2 sm:$0xff]  ;;  %v3688_v41 = vpop.f32.mrf.mxu1 }
 0x313   :  { %2830 = vmatmul.msk.bf16.gmra.mxu2 %vm661_vm0, %v1859_v20  ;;  %v1708_v20 = vld [vmem:[#allocation2 + $0x330] ss:$2 sm:$0xff]  ;;  %v1565_v31 = vpack.c.bf16 %v1542_v17, %v1540_v30 }
 0x314   :  { %v1716_v38 = vpack.c.bf16 %v1708_v20, %v1706_v18  ;;  %v1554_v17 = vld [vmem:[#allocation2 + $0x25a] ss:$2 sm:$0xff]  ;;  %v1552_v18 = vld [vmem:[#allocation2 + $0x22a] ss:$2 sm:$0xff] }
 0x315   :  { %v1089_v23 = vpop.f32.mrf.mxu3  ;;  %v1568_v20 = vpack.c.bf16 %v1554_v17, %v1552_v18  ;;  %v1558_v30 = vld [vmem:[#allocation2 + $0x2ba] ss:$2 sm:$0xff] }
 0x316   :  { %v3652_v24 = vadd.f32 %v1089_v23, %v1004_v3  ;;  %v1564_v3 = vpack.c.bf16 %v1538_v60, %v1536_v1  ;;  %v1852_v23 = vld [vmem:[#allocation2 + $0x301] ss:$2 sm:$0xff]  ;;  %v1544_v60 = vld [vmem:[#allocation2 + $0x13a] ss:$2 sm:$0xff] }
 0x31d   :  { %v1091_v27 = vpop.f32.mrf.mxu3 }
 0x31e   :  { %v3658_v32 = vadd.f32 %v1091_v27, %v1006_v7  ;;  %v1715_v7 = vpack.c.bf16 %v1704_v61, %v1702_v2  ;;  %v1854_v27 = vld [vmem:[#allocation2 + $0x331] ss:$2 sm:$0xff] }
 0x31f   :  { %v1862_v39 = vpack.c.bf16 %v1854_v27, %v1852_v23 }
 0x322   :  { %2794 = vmatmul.msk.bf16.vlgmr.msra.gmra.mxu3 %vm661_vm0, %v1563_v36  ;;  %2815 = vmatmul.msk.bf16.gmra.mxu1 %vm661_vm0, %v1714_v42  ;;  %v3692_v36 = vpop.f32.mrf.mxu2 }
 0x323   :  { %2831 = vmatmul.msk.bf16.gmra.mxu2 %vm661_vm0, %v1860_v44 }
 0x325   :  { %v1184_v48 = vpop.f32.mrf.mxu3 }
 0x326   :  { %v3668_v54 = vadd.f32 %v1184_v48, %v3414_v58  ;;  %v1546_v48 = vld [vmem:[#allocation2 + $0x16a] ss:$2 sm:$0xff] }
 0x327   :  { %v1566_v61 = vpack.c.bf16 %v1546_v48, %v1544_v60  ;;  %v1562_v48 = vld [vmem:[#allocation2 + $0x31a] ss:$2 sm:$0xff] }
 0x328   :  { %v1369_v17 = vadd.f32 %v3634_v46, %v3668_v54  ;;  %v1976_v54 = vld [vmem:[#allocation2 + $0xc2] ss:$2 sm:$0xff] }
 0x32d   :  { %v3670_v59 = vpop.f32.mrf.mxu3 }
 0x332   :  { %2795 = vmatmul.msk.bf16.gmra.mxu3 %vm661_vm0, %v1564_v3  ;;  %2816 = vmatmul.msk.bf16.gmra.mxu1 %vm661_vm0, %v1715_v7  ;;  %v1550_v3 = vld [vmem:[#allocation2 + $0x1fa] ss:$2 sm:$0xff]  ;;  %v1548_v7 = vld [vmem:[#allocation2 + $0x1ca] ss:$2 sm:$0xff] }
 0x333   :  { %2832 = vmatmul.msk.bf16.gmra.mxu2 %vm661_vm0, %v1861_v10  ;;  %v1567_v9 = vpack.c.bf16 %v1550_v3, %v1548_v7 }
 0x335   :  { %v1189_v58 = vpop.f32.mrf.mxu3 }
 0x336   :  { %v3680_v11 = vadd.f32 %v1189_v58, %v3450_v53  ;;  %v2913_v53 = vld [vmem:[#allocation6 + $0x80] sm:$0xff] }
 0x337   :  { %2057 = vmatpush.bf16.msrb.mxu3 %v2913_v53 }
 0x33d   :  { %v3686_v16 = vpop.f32.mrf.mxu3 }
 0x342   :  { %2796 = vmatmul.msk.bf16.gmra.mxu3 %vm661_vm0, %v1565_v31  ;;  %2817 = vmatmul.msk.bf16.gmra.mxu1 %vm661_vm0, %v1716_v38  ;;  %v1556_v31 = vld [vmem:[#allocation2 + $0x28a] ss:$2 sm:$0xff] }
 0x343   :  { %2833 = vmatmul.msk.bf16.gmra.mxu2 %vm661_vm0, %v1862_v39  ;;  %v1569_v38 = vpack.c.bf16 %v1558_v30, %v1556_v31  ;;  %v3745_v30 = vpop.f32.mrf.mxu2 }
 0x345   :  { %v1194_v42 = vpop.f32.mrf.mxu3 }
 0x346   :  { %v3696_v43 = vadd.f32 %v1194_v42, %v3489_v56  ;;  %v1560_v42 = vld [vmem:[#allocation2 + $0x2ea] ss:$2 sm:$0xff] }
 0x34d   :  { %v3698_v44 = vpop.f32.mrf.mxu3 }
 0x352   :  { %2797 = vmatmul.msk.bf16.gmra.mxu3 %vm661_vm0, %v1566_v61  ;;  %v1570_v61 = vpack.c.bf16 %v1562_v48, %v1560_v42  ;;  %v1349_v42 = vpop.f32.mrf.mxu1  ;;  %v1062_v48 = vadd.f32 %v3482_v37, %v3480_v33 }
 0x355   :  { %v1199_v63 = vpop.f32.mrf.mxu3 }
 0x356   :  { %v3702_v1 = vadd.f32 %v1199_v63, %v3525_v49 }
 0x35d   :  { %v3704_v2 = vpop.f32.mrf.mxu3 }
 0x362   :  { %2798 = vmatmul.msk.bf16.gmra.mxu3 %vm661_vm0, %v1567_v9 }
 0x365   :  { %v1204_v56 = vpop.f32.mrf.mxu3 }
 0x366   :  { %v3708_v10 = vadd.f32 %v1204_v56, %v3561_v51  ;;  %v1970_v56 = vld [vmem:[#allocation2 + $0x32] ss:$2 sm:$0xff] }
 0x36d   :  { %v3710_v58 = vpop.f32.mrf.mxu3 }
 0x372   :  { %2799 = vmatmul.msk.bf16.gmra.mxu3 %vm661_vm0, %v1568_v20  ;;  %v1057_v20 = vadd.f32 %v3443_v35, %v3441_v34  ;;  %v3753_v34 = vpop.f32.mrf.mxu2  ;;  %v1974_v35 = vld [vmem:[#allocation2 + $0x92] ss:$2 sm:$0xff] }
 0x375   :  { %v1209_v49 = vpop.f32.mrf.mxu3 }
 0x376   :  { %v3714_v23 = vadd.f32 %v1209_v49, %v3603_v8  ;;  %v2920_v8 = vld [vmem:[%s4020_s7 + $0x18] sm:$0xff]  ;;  %v1515_v49 = vadd.f32 %v3636_v47, %v1369_v17  ;;  %v2002_v47 = vpack.c.bf16 %v1976_v54, %v1974_v35  ;;  %v1067_v17 = vadd.f32 %v3518_v29, %v3516_v28  ;;  %v1984_v28 = vld [vmem:[#allocation2 + $0x182] ss:$2 sm:$0xff] }
 0x377   :  { %2409 = vmatpush.bf16.msrb.mxu2 %v2920_v8  ;;  %v1072_v54 = vadd.f32 %v3550_v22, %v3548_v21  ;;  %v2915_v21 = vld [vmem:[%s4018_s5] sm:$0xff] }
 0x37d   :  { %v3716_v27 = vpop.f32.mrf.mxu3 }
 0x382   :  { %2800 = vmatmul.msk.bf16.gmra.mxu3 %vm661_vm0, %v1569_v38 }
 0x385   :  { %v1214_v51 = vpop.f32.mrf.mxu3 }
 0x386   :  { %v3720_v39 = vadd.f32 %v1214_v51, %v3621_v6  ;;  %v2916_v6 = vld [vmem:[%s4018_s5 + $0x8] sm:$0xff] }
 0x387   :  { %2226 = vmatpush.bf16.msrb.mxu1 %v2916_v6  ;;  %v1351_v6 = vpop.f32.mrf.mxu1 }
 0x38b   :  { %2227 = vmatpush.bf16.msrb.mxu1 %v2915_v21 }
 0x38d   :  { %v1216_v53 = vpop.f32.mrf.mxu3 }
 0x38e   :  { %v3723_v60 = vadd.f32 %v1216_v53, %v3623_v12  ;;  %v1972_v12 = vld [vmem:[#allocation2 + $0x62] ss:$2 sm:$0xff] }
 0x38f   :  { %v2001_v18 = vpack.c.bf16 %v1972_v12, %v1970_v56  ;;  %v1978_v56 = vld [vmem:[#allocation2 + $0xf2] ss:$2 sm:$0xff] }
 0x392   :  { %2801 = vmatmul.msk.bf16.gmra.mxu3 %vm661_vm0, %v1570_v61 }
 0x395   :  { %v1219_v63 = vpop.f32.mrf.mxu3 }
 0x396   :  { %v3730_v3 = vadd.f32 %v1219_v63, %v3652_v24  ;;  %v1225_v24 = vadd.f32 %v3670_v59, %v1057_v20  ;;  %v1371_v59 = vadd.f32 %v3645_v15, %v3680_v11  ;;  %v3768_v11 = vpop.f32.mrf.mxu2  ;;  %v1354_v20 = vpop.f32.mrf.mxu1 }
 0x398   :  { %v1517_v61 = vadd.f32 %v3647_v19, %v1371_v59 }
 0x39d   :  { %v1221_v7 = vpop.f32.mrf.mxu3 }
 0x39e   :  { %v3736_v9 = vadd.f32 %v1221_v7, %v3658_v32  ;;  %v1370_v32 = vadd.f32 %v3641_v4, %v1225_v24  ;;  %v2919_v4 = vld [vmem:[%s4020_s7 + $0x10] sm:$0xff] }
 0x39f   :  { %2410 = vmatpush.bf16.msrb.mxu2 %v2919_v4  ;;  %v1980_v7 = vld [vmem:[#allocation2 + $0x122] ss:$2 sm:$0xff] }
 0x3a0   :  { %v1516_v51 = vadd.f32 %v3643_v5, %v1370_v32  ;;  %v1227_v5 = vadd.f32 %v3686_v16, %v1062_v48  ;;  %v1373_v16 = vadd.f32 %v3663_v45, %v3696_v43  ;;  %v2003_v19 = vpack.c.bf16 %v1980_v7, %v1978_v56 }
 0x3a2   :  { %2842 = vmatmul.msk.bf16.vlgmr.msrb.gmra.mxu3 %vm661_vm0, %v2001_v18  ;;  %v1372_v15 = vadd.f32 %v3654_v25, %v1227_v5  ;;  %v3778_v25 = vpop.f32.mrf.mxu2  ;;  %v1229_v18 = vadd.f32 %v3698_v44, %v1067_v17  ;;  %v1375_v44 = vadd.f32 %v3682_v13, %v3702_v1  ;;  %v1988_v5 = vld [vmem:[#allocation2 + $0x212] ss:$2 sm:$0xff] }
 0x3a4   :  { %v1518_v33 = vadd.f32 %v3656_v26, %v1372_v15  ;;  %v1519_v26 = vadd.f32 %v3665_v40, %v1373_v16  ;;  %v1521_v35 = vadd.f32 %v3684_v14, %v1375_v44  ;;  %v1986_v14 = vld [vmem:[#allocation2 + $0x1e2] ss:$2 sm:$0xff] }
 0x3a5   :  { %v1621_v31 = vpop.f32.mrf.mxu3 }
 0x3a6   :  { %v3747_v38 = vadd.f32 %v1621_v31, %v1515_v49  ;;  %v1374_v31 = vadd.f32 %v3672_v62, %v1229_v18  ;;  %v2918_v62 = vld [vmem:[%s4020_s7 + $0x8] sm:$0xff]  ;;  %v1992_v18 = vld [vmem:[#allocation2 + $0x272] ss:$2 sm:$0xff] }
 0x3a7   :  { %2411 = vmatpush.bf16.msrb.mxu2 %v2918_v62 }
 0x3a8   :  { %v1520_v45 = vadd.f32 %v3674_v0, %v1374_v31  ;;  %v1231_v0 = vadd.f32 %v3704_v2, %v1072_v54 }
 0x3aa   :  { %v3786_v43 = vpop.f32.mrf.mxu2  ;;  %v1376_v13 = vadd.f32 %v3688_v41, %v1231_v0  ;;  %v1077_v41 = vadd.f32 %v3598_v57, %v3596_v55  ;;  %v1990_v55 = vld [vmem:[#allocation2 + $0x242] ss:$2 sm:$0xff]  ;;  %v1379_v57 = vadd.f32 %v1354_v20, %v3714_v23 }
 0x3ac   :  { %v1522_v1 = vadd.f32 %v3692_v36, %v1376_v13  ;;  %v2312_v13 = vld [vmem:[#allocation3 + $0x20] ss:$2 sm:$0xff] }
 0x3ad   :  { %v1623_v46 = vpop.f32.mrf.mxu3 }
 0x3ae   :  { %v3751_v53 = vadd.f32 %v1623_v46, %v1516_v51  ;;  %v1356_v51 = vpop.f32.mrf.mxu1  ;;  %v1982_v46 = vld [vmem:[#allocation2 + $0x152] ss:$2 sm:$0xff] }
 0x3af   :  { %v2004_v40 = vpack.c.bf16 %v1984_v28, %v1982_v46 }
 0x3b2   :  { %2843 = vmatmul.msk.bf16.gmra.mxu3 %vm661_vm0, %v2002_v47  ;;  %v1507_v48 = vpop.f32.mrf.mxu2 }
 0x3b5   :  { %v1626_v8 = vpop.f32.mrf.mxu3 }
 0x3b6   :  { %v3765_v63 = vadd.f32 %v1626_v8, %v1517_v61  ;;  %v1359_v22 = vpop.f32.mrf.mxu1  ;;  %v1377_v61 = vadd.f32 %v1349_v42, %v3708_v10  ;;  %v2005_v8 = vpack.c.bf16 %v1988_v5, %v1986_v14  ;;  %v2000_v5 = vld [vmem:[#allocation2 + $0x332] ss:$2 sm:$0xff] }
 0x3b7   :  { %v1381_v54 = vadd.f32 %v1359_v22, %v3720_v39  ;;  %v1998_v22 = vld [vmem:[#allocation2 + $0x302] ss:$2 sm:$0xff] }
 0x3b8   :  { %v1523_v7 = vadd.f32 %v3745_v30, %v1377_v61  ;;  %v2917_v30 = vld [vmem:[%s4020_s7] sm:$0xff]  ;;  %v2008_v61 = vpack.c.bf16 %v2000_v5, %v1998_v22 }
 0x3b9   :  { %2412 = vmatpush.bf16.msrb.mxu2 %v2917_v30 }
 0x3ba   :  { %v1510_v15 = vpop.f32.mrf.mxu2 }
 0x3bd   :  { %v1628_v37 = vpop.f32.mrf.mxu3 }
 0x3be   :  { %v3771_v12 = vadd.f32 %v1628_v37, %v1518_v33  ;;  %v1361_v33 = vpop.f32.mrf.mxu1  ;;  %v1233_v37 = vadd.f32 %v3710_v58, %v1077_v41  ;;  %v1082_v58 = vadd.f32 %v3616_v52, %v3614_v50  ;;  %v1996_v52 = vld [vmem:[#allocation2 + $0x2d2] ss:$2 sm:$0xff] }
 0x3c0   :  { %v1378_v16 = vadd.f32 %v1351_v6, %v1233_v37  ;;  %v1525_v6 = vadd.f32 %v3768_v11, %v1379_v57  ;;  %v1527_v11 = vadd.f32 %v3786_v43, %v1381_v54 }
 0x3c2   :  { %2844 = vmatmul.msk.bf16.gmra.mxu3 %vm661_vm0, %v2003_v19  ;;  %v1512_v19 = vpop.f32.mrf.mxu2  ;;  %v1524_v17 = vadd.f32 %v3753_v34, %v1378_v16  ;;  %v1235_v34 = vadd.f32 %v3716_v27, %v1082_v58 }
 0x3c4   :  { %v1380_v20 = vadd.f32 %v1356_v51, %v1235_v34  ;;  %v1382_v51 = vadd.f32 %v1361_v33, %v3723_v60  ;;  %v2318_v34 = vld [vmem:[#allocation3 + $0x80] ss:$2 sm:$0xff] }
 0x3c5   :  { %v1631_v24 = vpop.f32.mrf.mxu3 }
 0x3c6   :  { %v3782_v49 = vadd.f32 %v1631_v24, %v1519_v26  ;;  %v1364_v10 = vpop.f32.mrf.mxu1  ;;  %v2006_v24 = vpack.c.bf16 %v1992_v18, %v1990_v55  ;;  %v1526_v28 = vadd.f32 %v3778_v25, %v1380_v20 }
 0x3c7   :  { %v1383_v43 = vadd.f32 %v1364_v10, %v3730_v3 }
 0x3c9   :  { %v1529_v60 = vadd.f32 %v1510_v15, %v1383_v43 }
 0x3ca   :  { %v1913_v31 = vpop.f32.mrf.mxu2 }
 0x3cd   :  { %v1633_v32 = vpop.f32.mrf.mxu3 }
 0x3ce   :  { %v3788_v29 = vadd.f32 %v1633_v32, %v1520_v45  ;;  %v1366_v23 = vpop.f32.mrf.mxu1 }
 0x3d2   :  { %2845 = vmatmul.msk.bf16.gmra.mxu3 %vm661_vm0, %v2004_v40  ;;  %v1915_v44 = vpop.f32.mrf.mxu2  ;;  %v1994_v40 = vld [vmem:[#allocation2 + $0x2a2] ss:$2 sm:$0xff] }
 0x3d3   :  { %v2007_v27 = vpack.c.bf16 %v1996_v52, %v1994_v40 }
 0x3d5   :  { %v1636_v59 = vpop.f32.mrf.mxu3 }
 0x3d6   :  { %v3800_v47 = vadd.f32 %v1636_v59, %v1521_v35  ;;  %v1767_v62 = vpop.f32.mrf.mxu1  ;;  %v2310_v59 = vld [vmem:[#allocation3] ss:$2 sm:$0xff] }
 0x3d7   :  { %v2341_v21 = vpack.c.bf16 %v2312_v13, %v2310_v59  ;;  %v1807_v55 = vadd.f32 %v1767_v62, %v3747_v38  ;;  %v3862_v38 = vld [vmem:[%s4017_s4 + $0x1] ss:$0 sm:$0xff] }
 0x3d9   :  { %2884 = vmatmul.msk.bf16.vlgmr.msrb.gmra.mxu2 %vm194_vm2, %v2341_v21  ;;  %v1953_v57 = vadd.f32 %v1913_v31, %v1807_v55  ;;  %v2322_v21 = vld [vmem:[#allocation3 + $0xc0] ss:$2 sm:$0xff] }
 0x3da   :  { %v1918_v25 = vpop.f32.mrf.mxu2  ;;  %v2326_v55 = vld [vmem:[#allocation3 + $0x100] ss:$2 sm:$0xff] }
 0x3dd   :  { %v1638_v4 = vpop.f32.mrf.mxu3 }
 0x3de   :  { %v3807_v2 = vadd.f32 %v1638_v4, %v1522_v1  ;;  %v1769_v1 = vpop.f32.mrf.mxu1  ;;  %v1528_v4 = vadd.f32 %v1507_v48, %v1382_v51  ;;  %v1384_v48 = vadd.f32 %v1366_v23, %v3736_v9  ;;  %v3856_v9 = vld [vmem:[%s4017_s4] ss:$0 sm:$0xff] }
 0x3df   :  { %v1808_v58 = vadd.f32 %v1769_v1, %v3751_v53  ;;  %v2324_v1 = vld [vmem:[#allocation3 + $0xe0] ss:$2 sm:$0xff] }
 0x3e1   :  { %v1954_v31 = vadd.f32 %v1915_v44, %v1808_v58 }
 0x3e2   :  { %2846 = vmatmul.msk.bf16.gmra.mxu3 %vm661_vm0, %v2005_v8  ;;  %v1920_v8 = vpop.f32.mrf.mxu2 }
 0x3e5   :  { %v1641_v36 = vpop.f32.mrf.mxu3 }
 0x3e6   :  { %v3815_v56 = vadd.f32 %v1641_v36, %v1523_v7  ;;  %v1772_v41 = vpop.f32.mrf.mxu1  ;;  %v2314_v7 = vld [vmem:[#allocation3 + $0x40] ss:$2 sm:$0xff] }
 0x3e7   :  { %v2316_v36 = vld [vmem:[#allocation3 + $0x60] ss:$2 sm:$0xff]  ;;  %v1809_v40 = vadd.f32 %v1772_v41, %v3765_v63 }
 0x3e8   :  { %v2342_v16 = vpack.c.bf16 %v2316_v36, %v2314_v7 }
 0x3e9   :  { %v1955_v59 = vadd.f32 %v1918_v25, %v1809_v40 }
 0x3ea   :  { %2885 = vmatmul.msk.bf16.gmra.mxu2 %vm194_vm2, %v2342_v16 }
 0x3ed   :  { %v1643_v42 = vpop.f32.mrf.mxu3 }
 0x3ee   :  { %v3818_v26 = vadd.f32 %v1643_v42, %v1524_v17  ;;  %v1530_v17 = vadd.f32 %v1512_v19, %v1384_v48  ;;  %v1923_v42 = vpop.f32.mrf.mxu2  ;;  %v1774_v10 = vpop.f32.mrf.mxu1 }
 0x3ef   :  { %v1810_v44 = vadd.f32 %v1774_v10, %v3771_v12 }
 0x3f1   :  { %v1956_v63 = vadd.f32 %v1920_v8, %v1810_v44 }
 0x3f2   :  { %2847 = vmatmul.msk.bf16.gmra.mxu3 %vm661_vm0, %v2006_v24 }
 0x3f5   :  { %v1646_v45 = vpop.f32.mrf.mxu3 }
 0x3f6   :  { %v3829_v32 = vadd.f32 %v1646_v45, %v1525_v6  ;;  %v1925_v24 = vpop.f32.mrf.mxu2  ;;  %v1777_v19 = vpop.f32.mrf.mxu1  ;;  %v2320_v6 = vld [vmem:[#allocation3 + $0xa0] ss:$2 sm:$0xff] }
 0x3f7   :  { %v2343_v45 = vpack.c.bf16 %v2320_v6, %v2318_v34  ;;  %v1811_v12 = vadd.f32 %v1777_v19, %v3782_v49 }
 0x3fa   :  { %2886 = vmatmul.msk.bf16.gmra.mxu2 %vm194_vm2, %v2343_v45 }
 0x3fd   :  { %v1648_v50 = vpop.f32.mrf.mxu3 }
 0x3fe   :  { %v3832_v46 = vadd.f32 %v1648_v50, %v1526_v28  ;;  %v1928_v52 = vpop.f32.mrf.mxu2 }
 0x402   :  { %2848 = vmatmul.msk.bf16.gmra.mxu3 %vm661_vm0, %v2007_v27  ;;  %v1779_v27 = vpop.f32.mrf.mxu1 }
 0x405   :  { %v1651_v0 = vpop.f32.mrf.mxu3 }
 0x406   :  { %v3837_v35 = vadd.f32 %v1651_v0, %v1527_v11 }
 0x40a   :  { %v1782_v5 = vpop.f32.mrf.mxu1 }
 0x40d   :  { %v1653_v39 = vpop.f32.mrf.mxu3 }
 0x40e   :  { %v3841_v14 = vadd.f32 %v1653_v39, %v1528_v4  ;;  %v2344_v4 = vpack.c.bf16 %v2324_v1, %v2322_v21  ;;  %v1930_v39 = vpop.f32.mrf.mxu2 }
 0x410   :  { %2887 = vmatmul.msk.bf16.gmra.mxu2 %vm194_vm2, %v2344_v4 }
 0x412   :  { %2849 = vmatmul.msk.bf16.gmra.mxu3 %vm661_vm0, %v2008_v61  ;;  %v1784_v8 = vpop.f32.mrf.mxu1 }
 0x415   :  { %v1656_v33 = vpop.f32.mrf.mxu3 }
 0x416   :  { %v3845_v37 = vadd.f32 %v1656_v33, %v1529_v60  ;;  %v1933_v7 = vpop.f32.mrf.mxu2 }
 0x41a   :  { %v1787_v45 = vpop.f32.mrf.mxu1 }
 0x41d   :  { %v1658_v18 = vpop.f32.mrf.mxu3 }
 0x41e   :  { %v3849_v3 = vadd.f32 %v1658_v18, %v1530_v17  ;;  %v1957_v17 = vadd.f32 %v1923_v42, %v1811_v12  ;;  %v1812_v18 = vadd.f32 %v1779_v27, %v3788_v29  ;;  %v1935_v34 = vpop.f32.mrf.mxu2  ;;  %v1813_v29 = vadd.f32 %v1782_v5, %v3800_v47  ;;  %v2330_v27 = vld [vmem:[#allocation3 + $0x140] ss:$2 sm:$0xff] }
 0x41f   :  { %v2336_v12 = vld [vmem:[#allocation3 + $0x1a0] ss:$2 sm:$0xff] }
 0x420   :  { %v1958_v49 = vadd.f32 %v1925_v24, %v1812_v18  ;;  %v1814_v24 = vadd.f32 %v1784_v8, %v3807_v2  ;;  %v1815_v2 = vadd.f32 %v1787_v45, %v3815_v56 }
 0x422   :  { %v1960_v47 = vadd.f32 %v1930_v39, %v1814_v24 }
 0x425   :  { %v2059_v15 = vpop.f32.mrf.mxu3 }
 0x426   :  { %v2099_v30 = vadd.f32 %v2059_v15, %v1953_v57  ;;  %v2328_v15 = vld [vmem:[#allocation3 + $0x120] ss:$2 sm:$0xff] }
 0x427   :  { %v2345_v57 = vpack.c.bf16 %v2328_v15, %v2326_v55 }
 0x428   :  { %v2119_v23 = vmul.f32 %v3856_v9, %v2099_v30 }
 0x429   :  { %2888 = vmatmul.msk.bf16.gmra.mxu2 %vm194_vm2, %v2345_v57 }
 0x42a   :  { %v2140_v28 = vadd.f32 %v3862_v38, %v2119_v23 }
 0x42c   :  { %v2156_v62 = vmax.f32 %v2140_v28, 0.0 }
 0x42d   :  { %v2061_v53 = vpop.f32.mrf.mxu3 }
 0x42e   :  { %v2100_v20 = vadd.f32 %v2061_v53, %v1954_v31 }
 0x430   :  { %v2120_v50 = vmul.f32 %v3856_v9, %v2100_v20 }
 0x432   :  { %v2141_v54 = vadd.f32 %v3862_v38, %v2120_v50  ;;  %v1959_v50 = vadd.f32 %v1928_v52, %v1813_v29 }
 0x434   :  { %v2157_v11 = vmax.f32 %v2141_v54, 0.0  ;;  %v1938_v54 = vpop.f32.mrf.mxu2 }
 0x435   :  { %v2064_v0 = vpop.f32.mrf.mxu3 }
 0x436   :  { %v2172_v51 = vpack.c.bf16 %v2157_v11, %v2156_v62  ;;  %v2101_v13 = vadd.f32 %v2064_v0, %v1955_v59  ;;  %v2332_v62 = vld [vmem:[#allocation3 + $0x160] ss:$2 sm:$0xff]  ;;  %v1789_v0 = vpop.f32.mrf.mxu1 }
 0x437   :  { %v2346_v11 = vpack.c.bf16 %v2332_v62, %v2330_v27  ;;  %v1816_v39 = vadd.f32 %v1789_v0, %v3818_v26 }
 0x438   :  { %2859 = vmatmul.msk.bf16.vlgmr.msrb.gmra.mxu1 %vm661_vm0, %v2172_v51  ;;  %v2121_v22 = vmul.f32 %v3856_v9, %v2101_v13 }
 0x439   :  { %2889 = vmatmul.msk.bf16.gmra.mxu2 %vm194_vm2, %v2346_v11  ;;  %v1962_v56 = vadd.f32 %v1935_v34, %v1816_v39 }
 0x43a   :  { %v2142_v60 = vadd.f32 %v3862_v38, %v2121_v22 }
 0x43c   :  { %v2158_v33 = vmax.f32 %v2142_v60, 0.0  ;;  %v1940_v1 = vpop.f32.mrf.mxu2 }
 0x43d   :  { %v2066_v43 = vpop.f32.mrf.mxu3 }
 0x43e   :  { %v2102_v61 = vadd.f32 %v2066_v43, %v1956_v63  ;;  %v1792_v63 = vpop.f32.mrf.mxu1 }
 0x43f   :  { %v1817_v26 = vadd.f32 %v1792_v63, %v3829_v32 }
 0x440   :  { %v2122_v25 = vmul.f32 %v3856_v9, %v2102_v61  ;;  %v1961_v61 = vadd.f32 %v1933_v7, %v1815_v2 }
 0x442   :  { %v2143_v41 = vadd.f32 %v3862_v38, %v2122_v25  ;;  %v2334_v25 = vld [vmem:[#allocation3 + $0x180] ss:$2 sm:$0xff] }
 0x444   :  { %v2159_v48 = vmax.f32 %v2143_v41, 0.0  ;;  %v2347_v41 = vpack.c.bf16 %v2336_v12, %v2334_v25 }
 0x445   :  { %v2069_v36 = vpop.f32.mrf.mxu3 }
 0x446   :  { %v2173_v16 = vpack.c.bf16 %v2159_v48, %v2158_v33  ;;  %v2103_v10 = vadd.f32 %v2069_v36, %v1957_v17  ;;  %v1943_v48 = vpop.f32.mrf.mxu2  ;;  %v1794_v17 = vpop.f32.mrf.mxu1 }
 0x448   :  { %2860 = vmatmul.msk.bf16.gmra.mxu1 %vm661_vm0, %v2173_v16  ;;  %v2123_v58 = vmul.f32 %v3856_v9, %v2103_v10 }
 0x449   :  { %2890 = vmatmul.msk.bf16.gmra.mxu2 %vm194_vm2, %v2347_v41 }
 0x44a   :  { %v2144_v6 = vadd.f32 %v3862_v38, %v2123_v58  ;;  %v1963_v58 = vadd.f32 %v1938_v54, %v1817_v26 }
 0x44c   :  { %v2160_v31 = vmax.f32 %v2144_v6, 0.0  ;;  %v2338_v6 = vld [vmem:[#allocation3 + $0x1c0] ss:$2 sm:$0xff] }
 0x44d   :  { %v2071_v30 = vpop.f32.mrf.mxu3 }
 0x44e   :  { %v2104_v19 = vadd.f32 %v2071_v30, %v1958_v49  ;;  %v1945_v49 = vpop.f32.mrf.mxu2  ;;  %v1818_v30 = vadd.f32 %v1794_v17, %v3832_v46  ;;  %v1797_v34 = vpop.f32.mrf.mxu1 }
 0x44f   :  { %v1819_v46 = vadd.f32 %v1797_v34, %v3837_v35 }
 0x450   :  { %v2124_v42 = vmul.f32 %v3856_v9, %v2104_v19  ;;  %v1964_v32 = vadd.f32 %v1940_v1, %v1818_v30 }
 0x451   :  { %v1965_v11 = vadd.f32 %v1943_v48, %v1819_v46 }
 0x452   :  { %v2145_v23 = vadd.f32 %v3862_v38, %v2124_v42  ;;  %v2340_v42 = vld [vmem:[#allocation3 + $0x1e0] ss:$2 sm:$0xff] }
 0x453   :  { %v2348_v45 = vpack.c.bf16 %v2340_v42, %v2338_v6 }
 0x454   :  { %v2161_v53 = vmax.f32 %v2145_v23, 0.0 }
 0x455   :  { %v2074_v20 = vpop.f32.mrf.mxu3 }
 0x456   :  { %v2174_v28 = vpack.c.bf16 %v2161_v53, %v2160_v31  ;;  %v2105_v40 = vadd.f32 %v2074_v20, %v1959_v50  ;;  %v1799_v24 = vpop.f32.mrf.mxu1 }
 0x457   :  { %v1820_v0 = vadd.f32 %v1799_v24, %v3841_v14 }
 0x458   :  { %2861 = vmatmul.msk.bf16.gmra.mxu1 %vm661_vm0, %v2174_v28  ;;  %v2125_v51 = vmul.f32 %v3856_v9, %v2105_v40  ;;  %v1948_v28 = vpop.f32.mrf.mxu2 }
 0x459   :  { %2891 = vmatmul.msk.bf16.gmra.mxu2 %vm194_vm2, %v2348_v45 }
 0x45a   :  { %v2146_v13 = vadd.f32 %v3862_v38, %v2125_v51 }
 0x45c   :  { %v2162_v4 = vmax.f32 %v2146_v13, 0.0 }
 0x45d   :  { %v2076_v59 = vpop.f32.mrf.mxu3 }
 0x45e   :  { %v2106_v44 = vadd.f32 %v2076_v59, %v1960_v47  ;;  %v1802_v13 = vpop.f32.mrf.mxu1 }
 0x45f   :  { %v1821_v1 = vadd.f32 %v1802_v13, %v3845_v37 }
 0x460   :  { %v2126_v52 = vmul.f32 %v3856_v9, %v2106_v44  ;;  %v1950_v47 = vpop.f32.mrf.mxu2  ;;  %v1966_v44 = vadd.f32 %v1945_v49, %v1820_v0 }
 0x462   :  { %v2147_v21 = vadd.f32 %v3862_v38, %v2126_v52 }
 0x464   :  { %v2163_v22 = vmax.f32 %v2147_v21, 0.0 }
 0x465   :  { %v2079_v5 = vpop.f32.mrf.mxu3 }
 0x466   :  { %v2175_v43 = vpack.c.bf16 %v2163_v22, %v2162_v4  ;;  %v2107_v60 = vadd.f32 %v2079_v5, %v1961_v61  ;;  %v1967_v61 = vadd.f32 %v1948_v28, %v1821_v1  ;;  %v1804_v39 = vpop.f32.mrf.mxu1 }
 0x468   :  { %2862 = vmatmul.msk.bf16.gmra.mxu1 %vm661_vm0, %v2175_v43  ;;  %v2127_v33 = vmul.f32 %v3856_v9, %v2107_v60  ;;  %v2414_v22 = vpop.f32.mrf.mxu2  ;;  %v1822_v60 = vadd.f32 %v1804_v39, %v3849_v3  ;;  %v3926_v3 = vld [vmem:[%s4021_s8] ss:$0 sm:$0xff] }
 0x46a   :  { %v2148_v8 = vadd.f32 %v3862_v38, %v2127_v33  ;;  %v1968_v41 = vadd.f32 %v1950_v47, %v1822_v60 }
 0x46c   :  { %v2164_v10 = vmax.f32 %v2148_v8, 0.0 }
 0x46d   :  { %v2081_v36 = vpop.f32.mrf.mxu3 }
 0x46e   :  { %v2108_v16 = vadd.f32 %v2081_v36, %v1962_v56 }
 0x470   :  { %v2128_v7 = vmul.f32 %v3856_v9, %v2108_v16  ;;  %v2416_v56 = vpop.f32.mrf.mxu2 }
 0x471   :  { %v2459_v6 = vmul.f32 %v3926_v3, %v2416_v56 }
 0x472   :  { %v2149_v18 = vadd.f32 %v3862_v38, %v2128_v7 }
 0x474   :  { %v2165_v55 = vmax.f32 %v2149_v18, 0.0 }
 0x475   :  { %v2084_v15 = vpop.f32.mrf.mxu3 }
 0x476   :  { %v2176_v57 = vpack.c.bf16 %v2165_v55, %v2164_v10  ;;  %v2109_v19 = vadd.f32 %v2084_v15, %v1963_v58  ;;  %v2458_v10 = vmul.f32 %v3926_v3, %v2414_v22  ;;  %v3942_v55 = vld [vmem:[%s4019_s6 + $0x1] ss:$0 sm:$0xff] }
 0x478   :  { %2863 = vmatmul.msk.bf16.gmra.mxu1 %vm661_vm0, %v2176_v57  ;;  %v2129_v29 = vmul.f32 %v3856_v9, %v2109_v19  ;;  %v2419_v26 = vpop.f32.mrf.mxu2 }
 0x47a   :  { %v2150_v53 = vadd.f32 %v3862_v38, %v2129_v29 }
 0x47c   :  { %v2166_v40 = vmax.f32 %v2150_v53, 0.0 }
 0x47d   :  { %v2086_v23 = vpop.f32.mrf.mxu3 }
 0x47e   :  { %v2110_v31 = vadd.f32 %v2086_v23, %v1964_v32 }
 0x480   :  { %v2130_v20 = vmul.f32 %v3856_v9, %v2110_v31  ;;  %v2421_v18 = vpop.f32.mrf.mxu2  ;;  %v2460_v31 = vmul.f32 %v3926_v3, %v2419_v26 }
 0x482   :  { %v2151_v50 = vadd.f32 %v3862_v38, %v2130_v20 }
 0x484   :  { %v2167_v54 = vmax.f32 %v2151_v50, 0.0 }
 0x485   :  { %v2089_v27 = vpop.f32.mrf.mxu3 }
 0x486   :  { %v2177_v62 = vpack.c.bf16 %v2167_v54, %v2166_v40  ;;  %v2111_v51 = vadd.f32 %v2089_v27, %v1965_v11  ;;  %v2461_v27 = vmul.f32 %v3926_v3, %v2421_v18 }
 0x488   :  { %2864 = vmatmul.msk.bf16.gmra.mxu1 %vm661_vm0, %v2177_v62  ;;  %v2131_v59 = vmul.f32 %v3856_v9, %v2111_v51  ;;  %v2424_v19 = vpop.f32.mrf.mxu2 }
 0x48a   :  { %v2152_v2 = vadd.f32 %v3862_v38, %v2131_v59 }
 0x48c   :  { %v2168_v14 = vmax.f32 %v2152_v2, 0.0 }
 0x48d   :  { %v2091_v52 = vpop.f32.mrf.mxu3 }
 0x48e   :  { %v2112_v35 = vadd.f32 %v2091_v52, %v1966_v44  ;;  %v2462_v44 = vmul.f32 %v3926_v3, %v2424_v19 }
 0x490   :  { %v2132_v21 = vmul.f32 %v3856_v9, %v2112_v35  ;;  %v2426_v28 = vpop.f32.mrf.mxu2 }
 0x492   :  { %v2153_v4 = vadd.f32 %v3862_v38, %v2132_v21 }
 0x494   :  { %v2169_v63 = vmax.f32 %v2153_v4, 0.0 }
 0x495   :  { %v2094_v5 = vpop.f32.mrf.mxu3 }
 0x496   :  { %v2178_v43 = vpack.c.bf16 %v2169_v63, %v2168_v14  ;;  %v2113_v25 = vadd.f32 %v2094_v5, %v1967_v61  ;;  %v2463_v14 = vmul.f32 %v3926_v3, %v2426_v28 }
 0x498   :  { %2865 = vmatmul.msk.bf16.gmra.mxu1 %vm661_vm0, %v2178_v43  ;;  %v2133_v12 = vmul.f32 %v3856_v9, %v2113_v25  ;;  %v2429_v0 = vpop.f32.mrf.mxu2 }
 0x499   :  { %v2464_v60 = vmul.f32 %v3926_v3, %v2429_v0 }
 0x49a   :  { %v2154_v48 = vadd.f32 %v3862_v38, %v2133_v12 }
 0x49c   :  { %v2170_v17 = vmax.f32 %v2154_v48, 0.0 }
 0x49d   :  { %v2096_v33 = vpop.f32.mrf.mxu3 }
 0x49e   :  { %v2114_v37 = vadd.f32 %v2096_v33, %v1968_v41 }
 0x4a0   :  { %v2134_v36 = vmul.f32 %v3856_v9, %v2114_v37  ;;  %v3932_v9 = vld [vmem:[%s4021_s8 + $0x1] ss:$0 sm:$0xff]  ;;  %v2431_v1 = vpop.f32.mrf.mxu2 }
 0x4a1   :  { %v2479_v57 = vadd.f32 %v3932_v9, %v2458_v10  ;;  %v2480_v29 = vadd.f32 %v3932_v9, %v2459_v6  ;;  %v2481_v46 = vadd.f32 %v3932_v9, %v2460_v31  ;;  %v2482_v51 = vadd.f32 %v3932_v9, %v2461_v27 }
 0x4a2   :  { %v2155_v16 = vadd.f32 %v3862_v38, %v2134_v36  ;;  %v3937_v38 = vld [vmem:[%s4019_s6] ss:$0 sm:$0xff]  ;;  %v2483_v35 = vadd.f32 %v3932_v9, %v2462_v44  ;;  %v2484_v43 = vadd.f32 %v3932_v9, %v2463_v14  ;;  %v2485_v33 = vadd.f32 %v3932_v9, %v2464_v60  ;;  %s3032_s6 = smov [#allocation8]  }
 0x4a3   :  { %s2547_s8 = sshll.u32 %s3032_s6, 4  ;;  %s2548_s8 = int_to_ptr.vmem [resolvable:$true] %s2547_s8 }
 0x4a4   :  { %v2171_v8 = vmax.f32 %v2155_v16, 0.0  ;;  %v2465_v16 = vmul.f32 %v3926_v3, %v2431_v1 }
 0x4a6   :  { %v2179_v7 = vpack.c.bf16 %v2171_v8, %v2170_v17  ;;  %v2486_v26 = vadd.f32 %v3932_v9, %v2465_v16 }
 0x4a8   :  { %2866 = vmatmul.msk.bf16.gmra.mxu1 %vm661_vm0, %v2179_v7 }
 0x4ac   :  { %v2434_v25 = vpop.f32.mrf.mxu2 }
 0x4b4   :  { %v2436_v8 = vpop.f32.mrf.mxu2 }
 0x4b5   :  { %v2229_v15 = vpop.f32.mrf.mxu1 }
 0x4b6   :  { %v2273_v58 = vmul.f32 %v3937_v38, %v2229_v15  ;;  %v2466_v15 = vmul.f32 %v3926_v3, %v2434_v25 }
 0x4b8   :  { %v2294_v49 = vadd.f32 %v3942_v55, %v2273_v58 }
 0x4ba   :  { %v2495_v30 = vadd.f32 %v2479_v57, %v2294_v49  ;;  %v2487_v49 = vadd.f32 %v3932_v9, %v2466_v15 }
 0x4bc   :  { %v2511_v34 = vmax.f32 %v2495_v30, 0.0  ;;  %v2439_v19 = vpop.f32.mrf.mxu2 }
 0x4bd   :  { %v2231_v42 = vpop.f32.mrf.mxu1  ;;  %v2468_v28 = vmul.f32 %v3926_v3, %v2439_v19 }
 0x4be   :  { %2527 = vst [vmem:[#allocation8] sm:$0xff] %v2511_v34  ;;  %v2274_v45 = vmul.f32 %v3937_v38, %v2231_v42 }
 0x4c0   :  { %v2295_v32 = vadd.f32 %v3942_v55, %v2274_v45  ;;  %v2467_v45 = vmul.f32 %v3926_v3, %v2436_v8 }
 0x4c2   :  { %v2496_v23 = vadd.f32 %v2480_v29, %v2295_v32 }
 0x4c4   :  { %v2512_v53 = vmax.f32 %v2496_v23, 0.0  ;;  %v2488_v23 = vadd.f32 %v3932_v9, %v2467_v45 }
 0x4c5   :  { %v2234_v20 = vpop.f32.mrf.mxu1 }
 0x4c6   :  { %2528 = vst [vmem:[#allocation8 + $0x8] sm:$0xff] %v2512_v53  ;;  %v2275_v50 = vmul.f32 %v3937_v38, %v2234_v20  ;;  %v2441_v53 = vpop.f32.mrf.mxu2 }
 0x4c7   :  { %v2469_v0 = vmul.f32 %v3926_v3, %v2441_v53 }
 0x4c8   :  { %v2296_v24 = vadd.f32 %v3942_v55, %v2275_v50 }
 0x4ca   :  { %v2497_v40 = vadd.f32 %v2481_v46, %v2296_v24  ;;  %v2489_v24 = vadd.f32 %v3932_v9, %v2468_v28 }
 0x4cc   :  { %v2513_v54 = vmax.f32 %v2497_v40, 0.0 }
 0x4cd   :  { %v2236_v62 = vpop.f32.mrf.mxu1 }
 0x4ce   :  { %2529 = vst [vmem:[#allocation8 + $0x10] sm:$0xff] %v2513_v54  ;;  %v2276_v11 = vmul.f32 %v3937_v38, %v2236_v62  ;;  %v2444_v62 = vpop.f32.mrf.mxu2 }
 0x4d0   :  { %v2297_v47 = vadd.f32 %v3942_v55, %v2276_v11 }
 0x4d2   :  { %v2498_v59 = vadd.f32 %v2482_v51, %v2297_v47 }
 0x4d4   :  { %v2514_v13 = vmax.f32 %v2498_v59, 0.0  ;;  %v2490_v59 = vadd.f32 %v3932_v9, %v2469_v0 }
 0x4d5   :  { %v2239_v52 = vpop.f32.mrf.mxu1 }
 0x4d6   :  { %2530 = vst [vmem:[#allocation8 + $0x18] sm:$0xff] %v2514_v13  ;;  %v2277_v2 = vmul.f32 %v3937_v38, %v2239_v52  ;;  %v2470_v52 = vmul.f32 %v3926_v3, %v2444_v62 }
 0x4d8   :  { %v2298_v21 = vadd.f32 %v3942_v55, %v2277_v2  ;;  %v2491_v1 = vadd.f32 %v3932_v9, %v2470_v52 }
 0x4da   :  { %v2499_v4 = vadd.f32 %v2483_v35, %v2298_v21  ;;  %v2446_v21 = vpop.f32.mrf.mxu2 }
 0x4dc   :  { %v2515_v22 = vmax.f32 %v2499_v4, 0.0 }
 0x4dd   :  { %v2241_v63 = vpop.f32.mrf.mxu1 }
 0x4de   :  { %2531 = vst [vmem:[#allocation8 + $0x20] sm:$0xff] %v2515_v22  ;;  %v2278_v5 = vmul.f32 %v3937_v38, %v2241_v63 }
 0x4e0   :  { %v2299_v61 = vadd.f32 %v3942_v55, %v2278_v5  ;;  %v2471_v5 = vmul.f32 %v3926_v3, %v2446_v21 }
 0x4e2   :  { %v2500_v39 = vadd.f32 %v2484_v43, %v2299_v61  ;;  %v2492_v60 = vadd.f32 %v3932_v9, %v2471_v5 }
 0x4e4   :  { %v2516_v12 = vmax.f32 %v2500_v39, 0.0  ;;  %v2449_v39 = vpop.f32.mrf.mxu2 }
 0x4e5   :  { %v2244_v41 = vpop.f32.mrf.mxu1 }
 0x4e6   :  { %2532 = vst [vmem:[#allocation8 + $0x28] sm:$0xff] %v2516_v12  ;;  %v2279_v56 = vmul.f32 %v3937_v38, %v2244_v41  ;;  %v2472_v41 = vmul.f32 %v3926_v3, %v2449_v39 }
 0x4e8   :  { %v2300_v37 = vadd.f32 %v3942_v55, %v2279_v56 }
 0x4ea   :  { %v2501_v48 = vadd.f32 %v2485_v33, %v2300_v37  ;;  %v2493_v37 = vadd.f32 %v3932_v9, %v2472_v41 }
 0x4ec   :  { %v2517_v36 = vmax.f32 %v2501_v48, 0.0  ;;  %v2451_v16 = vpop.f32.mrf.mxu2 }
 0x4ed   :  { %v2246_v17 = vpop.f32.mrf.mxu1 }
 0x4ee   :  { %2533 = vst [vmem:[#allocation8 + $0x30] sm:$0xff] %v2517_v36  ;;  %v2280_v7 = vmul.f32 %v3937_v38, %v2246_v17 }
 0x4f0   :  { %v2301_v18 = vadd.f32 %v3942_v55, %v2280_v7  ;;  %v2473_v7 = vmul.f32 %v3926_v3, %v2451_v16 }
 0x4f2   :  { %v2502_v10 = vadd.f32 %v2486_v26, %v2301_v18 }
 0x4f4   :  { %v2518_v57 = vmax.f32 %v2502_v10, 0.0  ;;  %v2494_v10 = vadd.f32 %v3932_v9, %v2473_v7 }
 0x4f5   :  { %v2249_v58 = vpop.f32.mrf.mxu1 }
 0x4f6   :  { %2534 = vst [vmem:[#allocation8 + $0x38] sm:$0xff] %v2518_v57  ;;  %v2281_v30 = vmul.f32 %v3937_v38, %v2249_v58 }
 0x4f8   :  { %v2302_v34 = vadd.f32 %v3942_v55, %v2281_v30 }
 0x4fa   :  { %v2503_v6 = vadd.f32 %v2487_v49, %v2302_v34 }
 0x4fc   :  { %v2519_v42 = vmax.f32 %v2503_v6, 0.0 }
 0x4fd   :  { %v2251_v29 = vpop.f32.mrf.mxu1 }
 0x4fe   :  { %2535 = vst [vmem:[#allocation8 + $0x40] sm:$0xff] %v2519_v42  ;;  %v2282_v32 = vmul.f32 %v3937_v38, %v2251_v29 }
 0x500   :  { %v2303_v31 = vadd.f32 %v3942_v55, %v2282_v32 }
 0x502   :  { %v2504_v20 = vadd.f32 %v2488_v23, %v2303_v31 }
 0x504   :  { %v2520_v46 = vmax.f32 %v2504_v20, 0.0 }
 0x505   :  { %v2254_v50 = vpop.f32.mrf.mxu1 }
 0x506   :  { %2536 = vst [vmem:[#allocation8 + $0x48] sm:$0xff] %v2520_v46  ;;  %v2283_v40 = vmul.f32 %v3937_v38, %v2254_v50 }
 0x508   :  { %v2304_v54 = vadd.f32 %v3942_v55, %v2283_v40 }
 0x50a   :  { %v2505_v27 = vadd.f32 %v2489_v24, %v2304_v54 }
 0x50c   :  { %v2521_v11 = vmax.f32 %v2505_v27, 0.0 }
 0x50d   :  { %v2256_v51 = vpop.f32.mrf.mxu1 }
 0x50e   :  { %2537 = vst [vmem:[#allocation8 + $0x50] sm:$0xff] %v2521_v11  ;;  %v2284_v47 = vmul.f32 %v3937_v38, %v2256_v51 }
 0x510   :  { %v2305_v44 = vadd.f32 %v3942_v55, %v2284_v47 }
 0x512   :  { %v2506_v13 = vadd.f32 %v2490_v59, %v2305_v44 }
 0x514   :  { %v2522_v35 = vmax.f32 %v2506_v13, 0.0 }
 0x515   :  { %v2259_v2 = vpop.f32.mrf.mxu1 }
 0x516   :  { %2538 = vst [vmem:[#allocation8 + $0x58] sm:$0xff] %v2522_v35  ;;  %v2285_v4 = vmul.f32 %v3937_v38, %v2259_v2 }
 0x518   :  { %v2306_v22 = vadd.f32 %v3942_v55, %v2285_v4 }
 0x51a   :  { %v2507_v14 = vadd.f32 %v2491_v1, %v2306_v22 }
 0x51c   :  { %v2523_v63 = vmax.f32 %v2507_v14, 0.0 }
 0x51d   :  { %v2261_v43 = vpop.f32.mrf.mxu1 }
 0x51e   :  { %2539 = vst [vmem:[#allocation8 + $0x60] sm:$0xff] %v2523_v63  ;;  %v2286_v61 = vmul.f32 %v3937_v38, %v2261_v43 }
 0x520   :  { %v2307_v25 = vadd.f32 %v3942_v55, %v2286_v61 }
 0x522   :  { %v2508_v12 = vadd.f32 %v2492_v60, %v2307_v25 }
 0x524   :  { %v2524_v33 = vmax.f32 %v2508_v12, 0.0 }
 0x525   :  { %v2264_v56 = vpop.f32.mrf.mxu1 }
 0x526   :  { %2540 = vst [vmem:[#allocation8 + $0x68] sm:$0xff] %v2524_v33  ;;  %v2287_v48 = vmul.f32 %v3937_v38, %v2264_v56 }
 0x528   :  { %v2308_v36 = vadd.f32 %v3942_v55, %v2287_v48 }
 0x52a   :  { %v2509_v17 = vadd.f32 %v2493_v37, %v2308_v36 }
 0x52c   :  { %v2525_v8 = vmax.f32 %v2509_v17, 0.0 }
 0x52d   :  { %v2266_v26 = vpop.f32.mrf.mxu1 }
 0x52e   :  { %2541 = vst [vmem:[#allocation8 + $0x70] sm:$0xff] %v2525_v8  ;;  %v2288_v18 = vmul.f32 %v3937_v38, %v2266_v26 }
 0x530   :  { %v2309_v15 = vadd.f32 %v3942_v55, %v2288_v18 }
 0x532   :  { %v2510_v57 = vadd.f32 %v2494_v10, %v2309_v15 }
 0x534   :  { %v2526_v58 = vmax.f32 %v2510_v57, 0.0 }
 0x536   :  { %2542 = vst [vmem:[#allocation8 + $0x78] sm:$0xff] %v2526_v58 }
 0x537   :  { %2555 = dma.vmem_to_hbm [thread:$0]  %s2548_s8, 2048, %s2550_s2, [#allocation5], %s3026_s17, %s3026_s17, %s3027_s18  }
 0x538   :  { %3023 = dma.done.wait [#allocation5], 2048  }
 0x539   :  { %3024 = vsyncadd [#allocation5], 4294965248 }
 0x53a   :  { %2560 = vsyncpa [#allocation4], 1 }
 0x53b   :  { %2561 = vsyncpa [#allocation7], 1 }
 0x53c   :  { %2562 = vsyncpa [#allocation5], 1 }

</bundles_post_ra>
